<compile_context>
chip_gen: v7x
topology: tpu7x:2x2x1
jax: 0.10.0
libtpu: 0.0.40
codegen_flags: <defaults>
</compile_context>

<pallas_src>
import jax
import jax.numpy as jnp
from jax.experimental import pallas as pl
from jax.experimental.pallas import tpu as pltpu

LANE = 128


def _round_up(n, m):
    return ((n + m - 1) // m) * m


# Layout: activations (batch, features) row-major; weights stored (in, out) so
# each layer computes y = x @ W + b (transpose of PyTorch's (out, in) storage,
# identical math).  Biases are (1, out) f32 for a clean lane broadcast.
def noisy_dqn_kernel(x_ref,
                     w1_ref, b1_ref,
                     w2_ref, b2_ref,
                     w3_ref, b3_ref,
                     w4_ref, b4_ref,
                     w5_ref, b5_ref,
                     out_ref):
    def dense(h_bf16, w_ref, b_ref):
        # bf16 operands on the MXU, f32 accumulation, f32 bias add on the VPU.
        return jnp.dot(h_bf16, w_ref[...],
                       preferred_element_type=jnp.float32) + b_ref[...]

    def relu_bf16(y_f32):
        # ReLU in f32 then narrow to bf16: the stored activation is half-width,
        # and the next matmul consumes it directly (no extra cast pass).
        return jnp.maximum(y_f32, 0.0).astype(jnp.bfloat16)

    h = x_ref[...].astype(jnp.bfloat16)                  # (TM, OBS)
    h = relu_bf16(dense(h, w1_ref, b1_ref))              # (TM, 128)
    h = relu_bf16(dense(h, w2_ref, b2_ref))              # (TM, 256)
    h = relu_bf16(dense(h, w3_ref, b3_ref))              # (TM, 512)
    # NoisyLinear(512, 512) (noise folded into w4/b4), then ReLU.
    h = relu_bf16(dense(h, w4_ref, b4_ref))              # (TM, 512)
    # NoisyLinear(512, n_actions) head, padded to 128 lanes, no activation.
    out_ref[...] = dense(h, w5_ref, b5_ref)              # (TM, 128) f32


def noisy_dqn_forward(x, kernel_params, n_actions, *, tm=512):
    """x: (B, obs_dim); kernel_params: output of prepare_kernel_params."""
    x = x.astype(jnp.float32)                  # mirrors `fx = x.float()`
    batch, obs_dim = x.shape
    tm = min(tm, _round_up(batch, 8))          # small batches -> one small tile
    padded_batch = _round_up(batch, tm)
    if padded_batch != batch:
        x = jnp.pad(x, ((0, padded_batch - batch), (0, 0)))
    head = kernel_params[-1].shape[-1]         # 128-padded head width

    def resident_spec(arr):
        # Full-array block, same block index every grid step -> DMA'd once,
        # stays resident in VMEM across the batch-tile loop.
        return pl.BlockSpec(arr.shape, lambda i: (0, 0))

    out = pl.pallas_call(
        noisy_dqn_kernel,
        out_shape=jax.ShapeDtypeStruct((padded_batch, head), jnp.float32),
        grid=(padded_batch // tm,),
        in_specs=[pl.BlockSpec((tm, obs_dim), lambda i: (i, 0))]
        + [resident_spec(p) for p in kernel_params],
        out_specs=pl.BlockSpec((tm, head), lambda i: (i, 0)),
        compiler_params=pltpu.CompilerParams(
            dimension_semantics=("parallel",),   # both TCs on v7x
            vmem_limit_bytes=64 << 20),
    )(x, *kernel_params)
    return out[:batch, :n_actions]


def _linear_init(key, fan_in, fan_out):
    # PyTorch nn.Linear default: U(-1/sqrt(fan_in), 1/sqrt(fan_in))
    kw, kb = jax.random.split(key)
    bound = 1.0 / jnp.sqrt(jnp.float32(fan_in))
    w = jax.random.uniform(kw, (fan_in, fan_out), jnp.float32, -bound, bound)
    b = jax.random.uniform(kb, (1, fan_out), jnp.float32, -bound, bound)
    return w, b


def _noisy_linear_init(key, fan_in, fan_out, sigma_init=0.017):
    # Standard NoisyLinear init: U(-sqrt(3/fan_in), sqrt(3/fan_in)) for w/b,
    # constant sigma_init for sigma_w/sigma_b.
    kw, kb = jax.random.split(key)
    std = jnp.sqrt(jnp.float32(3.0) / jnp.float32(fan_in))
    w = jax.random.uniform(kw, (fan_in, fan_out), jnp.float32, -std, std)
    b = jax.random.uniform(kb, (1, fan_out), jnp.float32, -std, std)
    sigma_w = jnp.full((fan_in, fan_out), sigma_init, jnp.float32)
    sigma_b = jnp.full((1, fan_out), sigma_init, jnp.float32)
    return w, b, sigma_w, sigma_b


def build_params(key, obs_dim, n_actions):
    keys = jax.random.split(key, 9)
    w1, b1 = _linear_init(keys[0], obs_dim, 128)
    w2, b2 = _linear_init(keys[1], 128, 256)
    w3, b3 = _linear_init(keys[2], 256, 512)
    nw4, nb4, sw4, sb4 = _noisy_linear_init(keys[3], 512, 512)
    nw5, nb5, sw5, sb5 = _noisy_linear_init(keys[4], 512, n_actions)

    # Per-forward Gaussian noise: weight-noise and bias-noise of each
    # NoisyLinear sampled with INDEPENDENT keys (matches PyTorch NoisyLinear),
    # then folded into effective weights exactly as F.linear(x, w + sigma*eps).
    w4 = nw4 + sw4 * jax.random.normal(keys[5], sw4.shape, jnp.float32)
    b4 = nb4 + sb4 * jax.random.normal(keys[6], sb4.shape, jnp.float32)
    w5 = nw5 + sw5 * jax.random.normal(keys[7], sw5.shape, jnp.float32)
    b5 = nb5 + sb5 * jax.random.normal(keys[8], sb5.shape, jnp.float32)

    return [w1, b1, w2, b2, w3, b3, w4, b4, w5, b5]


def prepare_kernel_params(params, n_actions):
    """One-time prep (amortized across RL steps): bf16 weights, f32 biases,
    head padded to a lane-dense multiple of 128 columns."""
    w1, b1, w2, b2, w3, b3, w4, b4, w5, b5 = params
    head = _round_up(max(n_actions, LANE), LANE)
    w5p = jnp.zeros((w5.shape[0], head), jnp.float32).at[:, :n_actions].set(w5)
    b5p = jnp.zeros((1, head), jnp.float32).at[:, :n_actions].set(b5)
    ws = [w.astype(jnp.bfloat16) for w in (w1, w2, w3, w4, w5p)]
    bs = [b.astype(jnp.float32) for b in (b1, b2, b3, b4, b5p)]
    return [ws[0], bs[0], ws[1], bs[1], ws[2], bs[2], ws[3], bs[3], ws[4], bs[4]]


def reference_forward(x, kernel_params, n_actions):
    # Pure-JAX reference with the SAME numerics (bf16 operands, f32 accum).
    w1, b1, w2, b2, w3, b3, w4, b4, w5, b5 = kernel_params

    def dense(h, w, b):
        return jnp.dot(h.astype(jnp.bfloat16), w,
                       preferred_element_type=jnp.float32) + b

    h = x.astype(jnp.float32)
    h = jnp.maximum(dense(h, w1, b1), 0.0)
    h = jnp.maximum(dense(h, w2, b2), 0.0)
    h = jnp.maximum(dense(h, w3, b3), 0.0)
    h = jnp.maximum(dense(h, w4, b4), 0.0)
    return dense(h, w5, b5)[:, :n_actions]


if __name__ == "__main__":
    OBS_DIM = 8       # LunarLander observation size
    N_ACTIONS = 4
    BATCH = 2

    key = jax.random.PRNGKey(0)
    k_x, k_p, k_x2 = jax.random.split(key, 3)

    params = build_params(k_p, OBS_DIM, N_ACTIONS)
    kparams = prepare_kernel_params(params, N_ACTIONS)

    # Small-batch check (single tile).
    x = jax.random.normal(k_x, (BATCH, OBS_DIM), jnp.float32)
    out = jax.block_until_ready(noisy_dqn_forward(x, kparams, N_ACTIONS))
    ref = reference_forward(x, kparams, N_ACTIONS)
    assert out.shape == (BATCH, N_ACTIONS)
    assert jnp.allclose(out, ref, atol=1e-2, rtol=1e-2), \
        float(jnp.max(jnp.abs(out - ref)))

    # Ragged-batch check (exercises batch padding + multi-step grid path).
    x2 = jax.random.normal(k_x2, (130, OBS_DIM), jnp.float32)
    out2 = jax.block_until_ready(noisy_dqn_forward(x2, kparams, N_ACTIONS, tm=64))
    ref2 = reference_forward(x2, kparams, N_ACTIONS)
    assert out2.shape == (130, N_ACTIONS)
    assert jnp.allclose(out2, ref2, atol=1e-2, rtol=1e-2), \
        float(jnp.max(jnp.abs(out2 - ref2)))

    print("KERNEL_OK")
</pallas_src>

<mosaic_0001>
module attributes {stable_mosaic.version = 11 : i64} {
  func.func @noisy_dqn_kernel(%arg0: i32, %arg1: memref<8x8xf32, #tpu.memory_space<vmem>>, %arg2: memref<8x128xbf16, #tpu.memory_space<vmem>>, %arg3: memref<1x128xf32, #tpu.memory_space<vmem>>, %arg4: memref<128x256xbf16, #tpu.memory_space<vmem>>, %arg5: memref<1x256xf32, #tpu.memory_space<vmem>>, %arg6: memref<256x512xbf16, #tpu.memory_space<vmem>>, %arg7: memref<1x512xf32, #tpu.memory_space<vmem>>, %arg8: memref<512x512xbf16, #tpu.memory_space<vmem>>, %arg9: memref<1x512xf32, #tpu.memory_space<vmem>>, %arg10: memref<512x128xbf16, #tpu.memory_space<vmem>>, %arg11: memref<1x128xf32, #tpu.memory_space<vmem>>, %arg12: memref<8x128xf32, #tpu.memory_space<vmem>>) attributes {dimension_semantics = [#tpu.dimension_semantics<parallel>], iteration_bounds = array<i64: 1>, scalar_prefetch = 0 : i64, scratch_operands = 0 : i64, tpu.core_type = #tpu.core_type<tc>, window_params = [{transform_indices = @transform_0, window_bounds = array<i64: 8, 8>}, {pipeline_mode = #tpu.pipeline_mode<synchronous>, transform_indices = @transform_1, window_bounds = array<i64: 8, 128>}, {pipeline_mode = #tpu.pipeline_mode<synchronous>, transform_indices = @transform_2, window_bounds = array<i64: 1, 128>}, {pipeline_mode = #tpu.pipeline_mode<synchronous>, transform_indices = @transform_3, window_bounds = array<i64: 128, 256>}, {pipeline_mode = #tpu.pipeline_mode<synchronous>, transform_indices = @transform_4, window_bounds = array<i64: 1, 256>}, {pipeline_mode = #tpu.pipeline_mode<synchronous>, transform_indices = @transform_5, window_bounds = array<i64: 256, 512>}, {pipeline_mode = #tpu.pipeline_mode<synchronous>, transform_indices = @transform_6, window_bounds = array<i64: 1, 512>}, {pipeline_mode = #tpu.pipeline_mode<synchronous>, transform_indices = @transform_7, window_bounds = array<i64: 512, 512>}, {pipeline_mode = #tpu.pipeline_mode<synchronous>, transform_indices = @transform_8, window_bounds = array<i64: 1, 512>}, {pipeline_mode = #tpu.pipeline_mode<synchronous>, transform_indices = @transform_9, window_bounds = array<i64: 512, 128>}, {pipeline_mode = #tpu.pipeline_mode<synchronous>, transform_indices = @transform_10, window_bounds = array<i64: 1, 128>}, {transform_indices = @transform_11, window_bounds = array<i64: 8, 128>}]} {
    %c0 = arith.constant 0 : index
    %c0_0 = arith.constant 0 : index
    %0 = vector.load %arg1[%c0, %c0_0] : memref<8x8xf32, #tpu.memory_space<vmem>>, vector<8x8xf32>
    %1 = arith.truncf %0 : vector<8x8xf32> to vector<8x8xbf16>
    %c0_1 = arith.constant 0 : index
    %c0_2 = arith.constant 0 : index
    %2 = vector.load %arg2[%c0_1, %c0_2] : memref<8x128xbf16, #tpu.memory_space<vmem>>, vector<8x128xbf16>
    %cst = arith.constant dense<0.000000e+00> : vector<8x128xf32>
    %3 = tpu.matmul %1, %2, %cst {dimension_numbers = #tpu.dot_dimension_numbers<[1], [0], [0], [1], [0, 0, 1, 1], [], []>} : vector<8x8xbf16>, vector<8x128xbf16>, vector<8x128xf32> -> vector<8x128xf32>
    %c0_3 = arith.constant 0 : index
    %c0_4 = arith.constant 0 : index
    %4 = vector.load %arg3[%c0_3, %c0_4] : memref<1x128xf32, #tpu.memory_space<vmem>>, vector<1x128xf32>
    %5 = vector.broadcast %4 : vector<1x128xf32> to vector<8x128xf32>
    %6 = arith.addf %3, %5 : vector<8x128xf32>
    %cst_5 = arith.constant 0.000000e+00 : f32
    %7 = vector.broadcast %cst_5 : f32 to vector<8x128xf32>
    %8 = arith.maximumf %6, %7 : vector<8x128xf32>
    %9 = arith.truncf %8 : vector<8x128xf32> to vector<8x128xbf16>
    %c0_6 = arith.constant 0 : index
    %c0_7 = arith.constant 0 : index
    %10 = vector.load %arg4[%c0_6, %c0_7] : memref<128x256xbf16, #tpu.memory_space<vmem>>, vector<128x256xbf16>
    %cst_8 = arith.constant dense<0.000000e+00> : vector<8x256xf32>
    %11 = tpu.matmul %9, %10, %cst_8 {dimension_numbers = #tpu.dot_dimension_numbers<[1], [0], [0], [1], [0, 0, 1, 1], [], []>} : vector<8x128xbf16>, vector<128x256xbf16>, vector<8x256xf32> -> vector<8x256xf32>
    %c0_9 = arith.constant 0 : index
    %c0_10 = arith.constant 0 : index
    %12 = vector.load %arg5[%c0_9, %c0_10] : memref<1x256xf32, #tpu.memory_space<vmem>>, vector<1x256xf32>
    %13 = vector.broadcast %12 : vector<1x256xf32> to vector<8x256xf32>
    %14 = arith.addf %11, %13 : vector<8x256xf32>
    %cst_11 = arith.constant 0.000000e+00 : f32
    %15 = vector.broadcast %cst_11 : f32 to vector<8x256xf32>
    %16 = arith.maximumf %14, %15 : vector<8x256xf32>
    %17 = arith.truncf %16 : vector<8x256xf32> to vector<8x256xbf16>
    %c0_12 = arith.constant 0 : index
    %c0_13 = arith.constant 0 : index
    %18 = vector.load %arg6[%c0_12, %c0_13] : memref<256x512xbf16, #tpu.memory_space<vmem>>, vector<256x512xbf16>
    %cst_14 = arith.constant dense<0.000000e+00> : vector<8x512xf32>
    %19 = tpu.matmul %17, %18, %cst_14 {dimension_numbers = #tpu.dot_dimension_numbers<[1], [0], [0], [1], [0, 0, 1, 1], [], []>} : vector<8x256xbf16>, vector<256x512xbf16>, vector<8x512xf32> -> vector<8x512xf32>
    %c0_15 = arith.constant 0 : index
    %c0_16 = arith.constant 0 : index
    %20 = vector.load %arg7[%c0_15, %c0_16] : memref<1x512xf32, #tpu.memory_space<vmem>>, vector<1x512xf32>
    %21 = vector.broadcast %20 : vector<1x512xf32> to vector<8x512xf32>
    %22 = arith.addf %19, %21 : vector<8x512xf32>
    %cst_17 = arith.constant 0.000000e+00 : f32
    %23 = vector.broadcast %cst_17 : f32 to vector<8x512xf32>
    %24 = arith.maximumf %22, %23 : vector<8x512xf32>
    %25 = arith.truncf %24 : vector<8x512xf32> to vector<8x512xbf16>
    %c0_18 = arith.constant 0 : index
    %c0_19 = arith.constant 0 : index
    %26 = vector.load %arg8[%c0_18, %c0_19] : memref<512x512xbf16, #tpu.memory_space<vmem>>, vector<512x512xbf16>
    %cst_20 = arith.constant dense<0.000000e+00> : vector<8x512xf32>
    %27 = tpu.matmul %25, %26, %cst_20 {dimension_numbers = #tpu.dot_dimension_numbers<[1], [0], [0], [1], [0, 0, 1, 1], [], []>} : vector<8x512xbf16>, vector<512x512xbf16>, vector<8x512xf32> -> vector<8x512xf32>
    %c0_21 = arith.constant 0 : index
    %c0_22 = arith.constant 0 : index
    %28 = vector.load %arg9[%c0_21, %c0_22] : memref<1x512xf32, #tpu.memory_space<vmem>>, vector<1x512xf32>
    %29 = vector.broadcast %28 : vector<1x512xf32> to vector<8x512xf32>
    %30 = arith.addf %27, %29 : vector<8x512xf32>
    %cst_23 = arith.constant 0.000000e+00 : f32
    %31 = vector.broadcast %cst_23 : f32 to vector<8x512xf32>
    %32 = arith.maximumf %30, %31 : vector<8x512xf32>
    %33 = arith.truncf %32 : vector<8x512xf32> to vector<8x512xbf16>
    %c0_24 = arith.constant 0 : index
    %c0_25 = arith.constant 0 : index
    %34 = vector.load %arg10[%c0_24, %c0_25] : memref<512x128xbf16, #tpu.memory_space<vmem>>, vector<512x128xbf16>
    %cst_26 = arith.constant dense<0.000000e+00> : vector<8x128xf32>
    %35 = tpu.matmul %33, %34, %cst_26 {dimension_numbers = #tpu.dot_dimension_numbers<[1], [0], [0], [1], [0, 0, 1, 1], [], []>} : vector<8x512xbf16>, vector<512x128xbf16>, vector<8x128xf32> -> vector<8x128xf32>
    %c0_27 = arith.constant 0 : index
    %c0_28 = arith.constant 0 : index
    %36 = vector.load %arg11[%c0_27, %c0_28] : memref<1x128xf32, #tpu.memory_space<vmem>>, vector<1x128xf32>
    %37 = vector.broadcast %36 : vector<1x128xf32> to vector<8x128xf32>
    %38 = arith.addf %35, %37 : vector<8x128xf32>
    %c0_29 = arith.constant 0 : index
    %c0_30 = arith.constant 0 : index
    %39 = vector.load %arg12[%c0_29, %c0_30] : memref<8x128xf32, #tpu.memory_space<vmem>>, vector<8x128xf32>
    tpu.vector_store %arg12[%c0_29, %c0_30], %38 {strides = array<i32>} : memref<8x128xf32, #tpu.memory_space<vmem>>, vector<8x128xf32>,
    return
  }
  func.func @transform_0(%arg0: i32) -> (i32, i32) {
    %c0_i32 = arith.constant 0 : i32
    %c0_i32_0 = arith.constant 0 : i32
    return %arg0, %c0_i32 : i32, i32
  }
  func.func @transform_1(%arg0: i32) -> (i32, i32) {
    %c0_i32 = arith.constant 0 : i32
    %c0_i32_0 = arith.constant 0 : i32
    %c0_i32_1 = arith.constant 0 : i32
    return %c0_i32, %c0_i32_0 : i32, i32
  }
  func.func @transform_2(%arg0: i32) -> (i32, i32) {
    %c0_i32 = arith.constant 0 : i32
    %c0_i32_0 = arith.constant 0 : i32
    %c0_i32_1 = arith.constant 0 : i32
    return %c0_i32, %c0_i32_0 : i32, i32
  }
  func.func @transform_3(%arg0: i32) -> (i32, i32) {
    %c0_i32 = arith.constant 0 : i32
    %c0_i32_0 = arith.constant 0 : i32
    %c0_i32_1 = arith.constant 0 : i32
    return %c0_i32, %c0_i32_0 : i32, i32
  }
  func.func @transform_4(%arg0: i32) -> (i32, i32) {
    %c0_i32 = arith.constant 0 : i32
    %c0_i32_0 = arith.constant 0 : i32
    %c0_i32_1 = arith.constant 0 : i32
    return %c0_i32, %c0_i32_0 : i32, i32
  }
  func.func @transform_5(%arg0: i32) -> (i32, i32) {
    %c0_i32 = arith.constant 0 : i32
    %c0_i32_0 = arith.constant 0 : i32
    %c0_i32_1 = arith.constant 0 : i32
    return %c0_i32, %c0_i32_0 : i32, i32
  }
  func.func @transform_6(%arg0: i32) -> (i32, i32) {
    %c0_i32 = arith.constant 0 : i32
    %c0_i32_0 = arith.constant 0 : i32
    %c0_i32_1 = arith.constant 0 : i32
    return %c0_i32, %c0_i32_0 : i32, i32
  }
  func.func @transform_7(%arg0: i32) -> (i32, i32) {
    %c0_i32 = arith.constant 0 : i32
    %c0_i32_0 = arith.constant 0 : i32
    %c0_i32_1 = arith.constant 0 : i32
    return %c0_i32, %c0_i32_0 : i32, i32
  }
  func.func @transform_8(%arg0: i32) -> (i32, i32) {
    %c0_i32 = arith.constant 0 : i32
    %c0_i32_0 = arith.constant 0 : i32
    %c0_i32_1 = arith.constant 0 : i32
    return %c0_i32, %c0_i32_0 : i32, i32
  }
  func.func @transform_9(%arg0: i32) -> (i32, i32) {
    %c0_i32 = arith.constant 0 : i32
    %c0_i32_0 = arith.constant 0 : i32
    %c0_i32_1 = arith.constant 0 : i32
    return %c0_i32, %c0_i32_0 : i32, i32
  }
  func.func @transform_10(%arg0: i32) -> (i32, i32) {
    %c0_i32 = arith.constant 0 : i32
    %c0_i32_0 = arith.constant 0 : i32
    %c0_i32_1 = arith.constant 0 : i32
    return %c0_i32, %c0_i32_0 : i32, i32
  }
  func.func @transform_11(%arg0: i32) -> (i32, i32) {
    %c0_i32 = arith.constant 0 : i32
    %c0_i32_0 = arith.constant 0 : i32
    return %arg0, %c0_i32 : i32, i32
  }
}

</mosaic_0001>

<bundles_post_ra>
// kernel: tpu_custom_call.1
= control target key start
LH: loop header
LB: loop body
LE: loop exit
PB: predicated region body
PF: predicated region fallthrough
CT: control target
= control target key end

     0   :  { %16 = vsyncpa [#allocation3], 0  ;;  %s3425_s0 = inlined_call_operand.hbm [shape: f32[8,8], index: 0, kind: input, shape index: {}]   ;;  %s3426_s1 = inlined_call_operand.hbm [shape: bf16[8,128], index: 1, kind: input, shape index: {}]   ;;  %s3427_s2 = inlined_call_operand.hbm [shape: f32[1,128], index: 2, kind: input, shape index: {}]   ;;  %s3428_s3 = inlined_call_operand.hbm [shape: bf16[128,256], index: 3, kind: input, shape index: {}]   ;;  %s3429_s4 = inlined_call_operand.hbm [shape: f32[1,256], index: 4, kind: input, shape index: {}]   ;;  %s3430_s5 = inlined_call_operand.hbm [shape: bf16[256,512], index: 5, kind: input, shape index: {}]   ;;  %s3431_s6 = inlined_call_operand.hbm [shape: f32[1,512], index: 6, kind: input, shape index: {}]   ;;  %s3432_s7 = inlined_call_operand.hbm [shape: bf16[512,512], index: 7, kind: input, shape index: {}]   ;;  %s3433_s8 = inlined_call_operand.hbm [shape: f32[1,512], index: 8, kind: input, shape index: {}]   ;;  %s3434_s9 = inlined_call_operand.hbm [shape: bf16[512,128], index: 9, kind: input, shape index: {}]   ;;  %s3435_s10 = inlined_call_operand.hbm [shape: f32[1,128], index: 10, kind: input, shape index: {}]   ;;  %s3436_s11 = inlined_call_operand.hbm [shape: f32[8,128], index: 11, kind: output, shape index: {}]  }
   0x1   :  { %17 = vsyncpa [#allocation6], 0 }
   0x2   :  { %18 = vsyncpa [#allocation9], 0 }
   0x3   :  { %19 = vsyncpa [#allocation12], 0 }
   0x4   :  { %20 = vsyncpa [#allocation15], 0 }
   0x5   :  { %21 = vsyncpa [#allocation18], 0 }
   0x6   :  { %22 = vsyncpa [#allocation4], 0  ;;  %s3160_s17 = smov [#allocation5]   ;;  %s3161_s19 = smov [#allocation8]  }
   0x7   :  { %s39_s18 = sshll.u32 %s3160_s17, 4  ;;  %s58_s20 = sshll.u32 %s3161_s19, 4  ;;  %s40_s18 = int_to_ptr.vmem [resolvable:$true] %s39_s18  ;;  %s3241_s20 = int_to_ptr.vmem [resolvable:$true] %s58_s20 }
   0x8   :  { %s2882_s23 = scalar_lea.hbm %s3426_s1, 64 }
   0x9   :  { %p2883_p0 = scmp.ne.s32.totalorder %s3426_s1, %s2882_s23  ;;  %p2886_p1 = scmp.lt.u32.totalorder %s2882_s23, %s3426_s1 }
   0xb   :  { %p2888_p2 = pnand %p2886_p1, %p2883_p0 }
   0xd   :  { %2891 = shalt.err (!%p2888_p2)
}
   0xe   :  { %s2892_s28 = scalar_lea.vmem %s40_s18, 64  ;;  %p2897_p4 = scmp.lt.s32.totalorder %s40_s18, %s40_s18 }
   0xf   :  { %p2893_p3 = scmp.ne.s32.totalorder %s40_s18, %s2892_s28  ;;  %p2898_p5 = scmp.lt.s32.totalorder %s2892_s28, %s2892_s28 }
  0x11   :  { %p2899_p6 = por %p2898_p5, %p2897_p4 }
  0x13   :  { %p2900_p7 = pnand %p2899_p6, %p2893_p3 }
  0x15   :  { %2903 = shalt.err (!%p2900_p7)
}
  0x16   :  { %42 = dma.hbm_to_vmem [thread:$0]  %s3426_s1, 64, %s40_s18, [#allocation6]  }
  0x17   :  { %s2904_s14 = scalar_lea.hbm %s3428_s3, 2048 }
  0x18   :  { %p2905_p8 = scmp.ne.s32.totalorder %s3428_s3, %s2904_s14  ;;  %p2908_p9 = scmp.lt.u32.totalorder %s2904_s14, %s3428_s3 }
  0x1a   :  { %p2910_p10 = pnand %p2908_p9, %p2905_p8 }
  0x1c   :  { %2913 = shalt.err (!%p2910_p10)
}
  0x1d   :  { %s2914_s21 = scalar_lea.vmem %s3241_s20, 2048  ;;  %p2919_p12 = scmp.lt.s32.totalorder %s3241_s20, %s3241_s20 }
  0x1e   :  { %p2915_p11 = scmp.ne.s32.totalorder %s3241_s20, %s2914_s21  ;;  %p2920_p13 = scmp.lt.s32.totalorder %s2914_s21, %s2914_s21 }
  0x20   :  { %p2921_p0 = por %p2920_p13, %p2919_p12 }
  0x22   :  { %p2922_p1 = pnand %p2921_p0, %p2915_p11 }
  0x24   :  { %2925 = shalt.err (!%p2922_p1)
}
  0x25   :  { %s3162_s1 = smov 128   ;;  %s3163_s18 = smov 8  }
  0x26   :  { %64 = dma.hbm_to_vmem [thread:$0]  %s3428_s3, 2048, %s3241_s20, [#allocation9], %s3162_s1, %s3162_s1, %s3163_s18  }
  0x27   :  { %s3164_s24 = smov [#allocation11]   ;;  %s2926_s28 = scalar_lea.hbm %s3430_s5, 8192 }
  0x28   :  { %s80_s25 = sshll.u32 %s3164_s24, 4  ;;  %p2927_p2 = scmp.ne.s32.totalorder %s3430_s5, %s2926_s28  ;;  %s81_s25 = int_to_ptr.vmem [resolvable:$true] %s80_s25 }
  0x29   :  { %p2930_p3 = scmp.lt.u32.totalorder %s2926_s28, %s3430_s5 }
  0x2b   :  { %p2932_p4 = pnand %p2930_p3, %p2927_p2 }
  0x2d   :  { %2935 = shalt.err (!%p2932_p4)
}
  0x2e   :  { %s2936_s14 = scalar_lea.vmem %s81_s25, 8192  ;;  %p2941_p6 = scmp.lt.s32.totalorder %s81_s25, %s81_s25 }
  0x2f   :  { %p2937_p5 = scmp.ne.s32.totalorder %s81_s25, %s2936_s14  ;;  %p2942_p7 = scmp.lt.s32.totalorder %s2936_s14, %s2936_s14 }
  0x31   :  { %p2943_p8 = por %p2942_p7, %p2941_p6 }
  0x33   :  { %p2944_p9 = pnand %p2943_p8, %p2937_p5 }
  0x35   :  { %2947 = shalt.err (!%p2944_p9)
}
  0x36   :  { %s3165_s3 = smov 256   ;;  %s3166_s20 = smov 16  }
  0x37   :  { %86 = dma.hbm_to_vmem [thread:$0]  %s3430_s5, 8192, %s81_s25, [#allocation12], %s3165_s3, %s3165_s3, %s3166_s20  }
  0x38   :  { %s3167_s17 = smov [#allocation14]   ;;  %s3168_s21 = smov [#allocation17]  }
  0x39   :  { %s102_s19 = sshll.u32 %s3167_s17, 4  ;;  %s124_s1 = sshll.u32 %s3168_s21, 4  ;;  %s103_s19 = int_to_ptr.vmem [resolvable:$true] %s102_s19  ;;  %s125_s1 = int_to_ptr.vmem [resolvable:$true] %s124_s1 }
  0x3a   :  { %s2948_s23 = scalar_lea.hbm %s3432_s7, 16384 }
  0x3b   :  { %p2949_p10 = scmp.ne.s32.totalorder %s3432_s7, %s2948_s23  ;;  %p2952_p11 = scmp.lt.u32.totalorder %s2948_s23, %s3432_s7 }
  0x3d   :  { %p2954_p12 = pnand %p2952_p11, %p2949_p10 }
  0x3f   :  { %2957 = shalt.err (!%p2954_p12)
}
  0x40   :  { %s2958_s5 = scalar_lea.vmem %s103_s19, 16384  ;;  %p2963_p0 = scmp.lt.s32.totalorder %s103_s19, %s103_s19 }
  0x41   :  { %p2959_p13 = scmp.ne.s32.totalorder %s103_s19, %s2958_s5  ;;  %p2964_p1 = scmp.lt.s32.totalorder %s2958_s5, %s2958_s5 }
  0x43   :  { %p2965_p2 = por %p2964_p1, %p2963_p0 }
  0x45   :  { %p2966_p3 = pnand %p2965_p2, %p2959_p13 }
  0x47   :  { %2969 = shalt.err (!%p2966_p3)
}
  0x48   :  { %108 = dma.hbm_to_vmem [thread:$0]  %s3432_s7, 16384, %s103_s19, [#allocation15], %s3165_s3, %s3165_s3, %s3166_s20  }
  0x49   :  { %s2970_s13 = scalar_lea.hbm %s3434_s9, 4096 }
  0x4a   :  { %p2971_p4 = scmp.ne.s32.totalorder %s3434_s9, %s2970_s13  ;;  %p2974_p5 = scmp.lt.u32.totalorder %s2970_s13, %s3434_s9 }
  0x4c   :  { %p2976_p6 = pnand %p2974_p5, %p2971_p4 }
  0x4e   :  { %2979 = shalt.err (!%p2976_p6)
}
  0x4f   :  { %s2980_s21 = scalar_lea.vmem %s125_s1, 4096  ;;  %p2985_p8 = scmp.lt.s32.totalorder %s125_s1, %s125_s1 }
  0x50   :  { %p2981_p7 = scmp.ne.s32.totalorder %s125_s1, %s2980_s21  ;;  %p2986_p9 = scmp.lt.s32.totalorder %s2980_s21, %s2980_s21 }
  0x52   :  { %p2987_p10 = por %p2986_p9, %p2985_p8 }
  0x54   :  { %p2988_p11 = pnand %p2987_p10, %p2981_p7 }
  0x56   :  { %2991 = shalt.err (!%p2988_p11)
}
  0x57   :  { %s3169_s7 = smov 64   ;;  %s3170_s3 = smov 4  }
  0x58   :  { %130 = dma.hbm_to_vmem [thread:$0]  %s3434_s9, 4096, %s125_s1, [#allocation18], %s3169_s7, %s3169_s7, %s3170_s3  }
  0x59   :  { %s3171_s18 = smov [#allocation2]   ;;  %s3172_s23 = smov [#allocation7]  }
  0x5a   :  { %s29_s22 = sshll.u32 %s3171_s18, 4  ;;  %s49_s24 = sshll.u32 %s3172_s23, 4  ;;  %s30_s22 = int_to_ptr.vmem [resolvable:$true] %s29_s22  ;;  %s50_s24 = int_to_ptr.vmem [resolvable:$true] %s49_s24 }
  0x5b   :  { %s2992_s28 = scalar_lea.hbm %s3425_s0, 128 }
  0x5c   :  { %p2993_p12 = scmp.ne.s32.totalorder %s3425_s0, %s2992_s28  ;;  %p2996_p13 = scmp.lt.u32.totalorder %s2992_s28, %s3425_s0 }
  0x5e   :  { %p2998_p0 = pnand %p2996_p13, %p2993_p12 }
  0x60   :  { %3001 = shalt.err (!%p2998_p0)
}
  0x61   :  { %s3002_s9 = scalar_lea.vmem %s30_s22, 128  ;;  %p3007_p2 = scmp.lt.s32.totalorder %s30_s22, %s30_s22 }
  0x62   :  { %p3003_p1 = scmp.ne.s32.totalorder %s30_s22, %s3002_s9  ;;  %p3008_p3 = scmp.lt.s32.totalorder %s3002_s9, %s3002_s9 }
  0x64   :  { %p3009_p4 = por %p3008_p3, %p3007_p2 }
  0x66   :  { %p3010_p5 = pnand %p3009_p4, %p3003_p1 }
  0x68   :  { %3013 = shalt.err (!%p3010_p5)
}
  0x69   :  { %32 = dma.hbm_to_vmem [thread:$0]  %s3425_s0, 128, %s30_s22, [#allocation3]  }
  0x6a   :  { %s3014_s15 = scalar_lea.hbm %s3427_s2, 16 }
  0x6b   :  { %p3015_p6 = scmp.ne.s32.totalorder %s3427_s2, %s3014_s15  ;;  %p3018_p7 = scmp.lt.u32.totalorder %s3014_s15, %s3427_s2 }
  0x6d   :  { %p3020_p8 = pnand %p3018_p7, %p3015_p6 }
  0x6f   :  { %3023 = shalt.err (!%p3020_p8)
}
  0x70   :  { %s3024_s3 = scalar_lea.vmem %s50_s24, 16  ;;  %s3028_s20 = scalar_lea.vmem %s50_s24, 32 }
  0x71   :  { %p3025_p9 = scmp.ne.s32.totalorder %s50_s24, %s3024_s3  ;;  %p3029_p10 = scmp.lt.s32.totalorder %s50_s24, %s50_s24 }
  0x72   :  { %p3030_p11 = scmp.lt.s32.totalorder %s3028_s20, %s3024_s3 }
  0x74   :  { %p3031_p12 = por %p3030_p11, %p3029_p10 }
  0x76   :  { %p3032_p13 = pnand %p3031_p12, %p3025_p9 }
  0x78   :  { %3035 = shalt.err (!%p3032_p13)
}
  0x79   :  { %52 = dma.hbm_to_vmem [thread:$0]  %s3427_s2, 16, %s50_s24, [#allocation6]  }
  0x7a   :  { %s3173_s18 = smov [#allocation10]   ;;  %s3174_s23 = smov [#allocation13]  }
  0x7b   :  { %s71_s22 = sshll.u32 %s3173_s18, 4  ;;  %s93_s26 = sshll.u32 %s3174_s23, 4  ;;  %s72_s22 = int_to_ptr.vmem [resolvable:$true] %s71_s22  ;;  %s94_s26 = int_to_ptr.vmem [resolvable:$true] %s93_s26 }
  0x7c   :  { %s3036_s5 = scalar_lea.hbm %s3429_s4, 32 }
  0x7d   :  { %p3037_p0 = scmp.ne.s32.totalorder %s3429_s4, %s3036_s5  ;;  %p3040_p1 = scmp.lt.u32.totalorder %s3036_s5, %s3429_s4 }
  0x7f   :  { %p3042_p2 = pnand %p3040_p1, %p3037_p0 }
  0x81   :  { %3045 = shalt.err (!%p3042_p2)
}
  0x82   :  { %s3046_s2 = scalar_lea.vmem %s72_s22, 32  ;;  %p3051_p4 = scmp.lt.s32.totalorder %s72_s22, %s72_s22 }
  0x83   :  { %p3047_p3 = scmp.ne.s32.totalorder %s72_s22, %s3046_s2  ;;  %p3052_p5 = scmp.lt.s32.totalorder %s3046_s2, %s3046_s2 }
  0x85   :  { %p3053_p6 = por %p3052_p5, %p3051_p4 }
  0x87   :  { %p3054_p7 = pnand %p3053_p6, %p3047_p3 }
  0x89   :  { %3057 = shalt.err (!%p3054_p7)
}
  0x8a   :  { %74 = dma.hbm_to_vmem [thread:$0]  %s3429_s4, 32, %s72_s22, [#allocation9]  }
  0x8b   :  { %s3058_s14 = scalar_lea.hbm %s3431_s6, 64 }
  0x8c   :  { %p3059_p8 = scmp.ne.s32.totalorder %s3431_s6, %s3058_s14  ;;  %p3062_p9 = scmp.lt.u32.totalorder %s3058_s14, %s3431_s6 }
  0x8e   :  { %p3064_p10 = pnand %p3062_p9, %p3059_p8 }
  0x90   :  { %3067 = shalt.err (!%p3064_p10)
}
  0x91   :  { %s3068_s7 = scalar_lea.vmem %s94_s26, 64  ;;  %p3073_p12 = scmp.lt.s32.totalorder %s94_s26, %s94_s26 }
  0x92   :  { %p3069_p11 = scmp.ne.s32.totalorder %s94_s26, %s3068_s7  ;;  %p3074_p13 = scmp.lt.s32.totalorder %s3068_s7, %s3068_s7 }
  0x94   :  { %p3075_p0 = por %p3074_p13, %p3073_p12 }
  0x96   :  { %p3076_p1 = pnand %p3075_p0, %p3069_p11 }
  0x98   :  { %3079 = shalt.err (!%p3076_p1)
}
  0x99   :  { %96 = dma.hbm_to_vmem [thread:$0]  %s3431_s6, 64, %s94_s26, [#allocation12]  }
  0x9a   :  { %s3175_s20 = smov [#allocation16]   ;;  %s3176_s19 = smov [#allocation19]  }
  0x9b   :  { %s115_s0 = sshll.u32 %s3175_s20, 4  ;;  %s137_s18 = sshll.u32 %s3176_s19, 4  ;;  %s116_s0 = int_to_ptr.vmem [resolvable:$true] %s115_s0  ;;  %s138_s18 = int_to_ptr.vmem [resolvable:$true] %s137_s18 }
  0x9c   :  { %s3080_s27 = scalar_lea.hbm %s3433_s8, 64 }
  0x9d   :  { %p3081_p2 = scmp.ne.s32.totalorder %s3433_s8, %s3080_s27  ;;  %p3084_p3 = scmp.lt.u32.totalorder %s3080_s27, %s3433_s8 }
  0x9f   :  { %p3086_p4 = pnand %p3084_p3, %p3081_p2 }
  0xa1   :  { %3089 = shalt.err (!%p3086_p4)
}
  0xa2   :  { %s3090_s6 = scalar_lea.vmem %s116_s0, 64  ;;  %p3095_p6 = scmp.lt.s32.totalorder %s116_s0, %s116_s0 }
  0xa3   :  { %p3091_p5 = scmp.ne.s32.totalorder %s116_s0, %s3090_s6  ;;  %p3096_p7 = scmp.lt.s32.totalorder %s3090_s6, %s3090_s6 }
  0xa5   :  { %p3097_p8 = por %p3096_p7, %p3095_p6 }
  0xa7   :  { %p3098_p9 = pnand %p3097_p8, %p3091_p5 }
  0xa9   :  { %3101 = shalt.err (!%p3098_p9)
}
  0xaa   :  { %118 = dma.hbm_to_vmem [thread:$0]  %s3433_s8, 64, %s116_s0, [#allocation15]  }
  0xab   :  { %s3102_s24 = scalar_lea.hbm %s3435_s10, 16 }
  0xac   :  { %p3103_p10 = scmp.ne.s32.totalorder %s3435_s10, %s3102_s24  ;;  %p3106_p11 = scmp.lt.u32.totalorder %s3102_s24, %s3435_s10 }
  0xae   :  { %p3108_p12 = pnand %p3106_p11, %p3103_p10 }
  0xb0   :  { %3111 = shalt.err (!%p3108_p12)
}
  0xb1   :  { %s3112_s15 = scalar_lea.vmem %s138_s18, 16  ;;  %s3116_s16 = scalar_lea.vmem %s138_s18, 32 }
  0xb2   :  { %p3113_p13 = scmp.ne.s32.totalorder %s138_s18, %s3112_s15  ;;  %p3117_p0 = scmp.lt.s32.totalorder %s138_s18, %s138_s18 }
  0xb3   :  { %p3118_p1 = scmp.lt.s32.totalorder %s3116_s16, %s3112_s15 }
  0xb5   :  { %p3119_p2 = por %p3118_p1, %p3117_p0 }
  0xb7   :  { %p3120_p3 = pnand %p3119_p2, %p3113_p13 }
  0xb9   :  { %3123 = shalt.err (!%p3120_p3)
}
  0xba   :  { %140 = dma.hbm_to_vmem [thread:$0]  %s3435_s10, 16, %s138_s18, [#allocation18]  }
  0xbb   :  { %3146 = dma.done.wait [#allocation3], 128  }
  0xbc   :  { %3147 = vsyncadd [#allocation3], 4294967168 }
  0xbd   :  { %3148 = dma.done.wait [#allocation6], 80  }
  0xbe   :  { %3149 = vsyncadd [#allocation6], 4294967216 }
  0xbf   :  { %3150 = dma.done.wait [#allocation9], 2080  }
  0xc0   :  { %3151 = vsyncadd [#allocation9], 4294965216 }
  0xc1   :  { %3152 = dma.done.wait [#allocation12], 8256  }
  0xc2   :  { %3153 = vsyncadd [#allocation12], 4294959040 }
  0xc3   :  { %3154 = dma.done.wait [#allocation15], 16448  }
  0xc4   :  { %3155 = vsyncadd [#allocation15], 4294950848 }
  0xc5   :  { %3156 = dma.done.wait [#allocation18], 4112  }
  0xc6   :  { %3157 = vsyncadd [#allocation18], 4294963184  ;;  %v3177_v0 = vmov 0.0   ;;  %vm3178_vm0 = vmmov 0   ;;  %vm189_vm1 = vcmask 1043456   ;;  %v175_v2 = vld [vmem:[#allocation2] sm:$0xff] }
  0xc7   :  { %2499 = vmatprep.subr.bf16.mxu0 %v3177_v0  ;;  %2501 = vmatprep.mubr.msk.bf16.mxu0 %vm3178_vm0, %v3177_v0  ;;  %v177_v1 = vld [vmem:[#allocation5] sm:$0xf]  ;;  %v176_v4 = vpack.c.bf16 %v175_v2, %v175_v2  ;;  %v2538_v5 = vld [vmem:[#allocation8 + $0x4] ss:$8 sps:$4 sm:$0xff]   ;;  %v2540_v6 = vld [vmem:[#allocation8] ss:$8 sps:$4 sm:$0xff]  }
  0xc8   :  { %v191_v3 = vsel %vm189_vm1, %v177_v1, 0  ;;  %vm185_vm2 = vcmask 64512   ;;  %v2541_v7 = vld [vmem:[#allocation8 + $0x14] ss:$8 sps:$4 sm:$0xff]   ;;  %343 = vmatprep.subr.bf16.mxu1 %v2538_v5  ;;  %v2543_v8 = vld [vmem:[#allocation8 + $0x10] ss:$8 sps:$4 sm:$0xff]  }
  0xc9   :  { %2500 = vmatpush3.bf16.msra.mxu0 %v191_v3  ;;  %344 = vmatpush1.bf16.msra.mxu1 %v2540_v6  ;;  %v2544_v9 = vld [vmem:[#allocation8 + $0x24] ss:$8 sps:$4 sm:$0xff]   ;;  %v2546_v10 = vld [vmem:[#allocation8 + $0x20] ss:$8 sps:$4 sm:$0xff]   ;;  %v2547_v11 = vld [vmem:[#allocation8 + $0x34] ss:$8 sps:$4 sm:$0xff]  }
  0xca   :  { %345 = vmatprep.subr.bf16.mxu1 %v2541_v7  ;;  %v2549_v12 = vld [vmem:[#allocation8 + $0x30] ss:$8 sps:$4 sm:$0xff]   ;;  %v2550_v13 = vld [vmem:[#allocation8 + $0x44] ss:$8 sps:$4 sm:$0xff]   ;;  %v2552_v14 = vld [vmem:[#allocation8 + $0x40] ss:$8 sps:$4 sm:$0xff]  }
  0xcb   :  { %v2553_v15 = vld [vmem:[#allocation8 + $0x54] ss:$8 sps:$4 sm:$0xff]   ;;  %v2555_v16 = vld [vmem:[#allocation8 + $0x50] ss:$8 sps:$4 sm:$0xff]   ;;  %v2556_v17 = vld [vmem:[#allocation8 + $0x64] ss:$8 sps:$4 sm:$0xff]  }
  0xcc   :  { %2502 = vmatmul.mubr.msk.bf16.vlgmr.msra.gmra.mrb[0].mxu0 %vm185_vm2, %v176_v4  ;;  %v2558_v18 = vld [vmem:[#allocation8 + $0x60] ss:$8 sps:$4 sm:$0xff]   ;;  %v2559_v19 = vld [vmem:[#allocation8 + $0x74] ss:$8 sps:$4 sm:$0xff]   ;;  %v2561_v20 = vld [vmem:[#allocation8 + $0x70] ss:$8 sps:$4 sm:$0xff]  }
  0xcd   :  { %346 = vmatpush1.bf16.msra.mxu1 %v2543_v8  ;;  %v3179_v21 = vmov 0   ;;  %v2562_v22 = vld [vmem:[#allocation11] ss:$16 sps:$4 sm:$0xff]   ;;  %v2564_v23 = vld [vmem:[#allocation11 + $0x4] ss:$16 sps:$4 sm:$0xff]   ;;  %s3180_s10 = smov [#allocation20]  }
  0xce   :  { %347 = vmatprep.subr.bf16.mxu1 %v2544_v9  ;;  %375 = vmatprep.mubr.bf16.mxu1 %v3179_v21  ;;  %v2567_v24 = vld [vmem:[#allocation11 + $0xc] ss:$16 sps:$4 sm:$0xff]   ;;  %v2570_v25 = vld [vmem:[#allocation11 + $0x24] ss:$16 sps:$4 sm:$0xff]   ;;  %v2568_v26 = vld [vmem:[#allocation11 + $0x20] ss:$16 sps:$4 sm:$0xff]  }
  0xcf   :  { %794 = vmatprep.subr.bf16.mxu0 %v2564_v23  ;;  %v2576_v27 = vld [vmem:[#allocation11 + $0x44] ss:$16 sps:$4 sm:$0xff]   ;;  %v2574_v28 = vld [vmem:[#allocation11 + $0x40] ss:$16 sps:$4 sm:$0xff]   ;;  %v2210_v51 = vld [vmem:[#allocation7] ss:$0 sm:$0xff] }
  0xd0   :  { %795 = vmatpush1.bf16.msra.mxu0 %v2562_v22  ;;  %v2582_v29 = vld [vmem:[#allocation11 + $0x64] ss:$16 sps:$4 sm:$0xff]   ;;  %v2580_v30 = vld [vmem:[#allocation11 + $0x60] ss:$16 sps:$4 sm:$0xff]   ;;  %v2565_v58 = vld [vmem:[#allocation11 + $0x8] ss:$16 sps:$4 sm:$0xff]  }
  0xd1   :  { %348 = vmatpush1.bf16.msra.mxu1 %v2546_v10  ;;  %796 = vmatprep.subr.bf16.mxu0 %v2570_v25  ;;  %v2588_v31 = vld [vmem:[#allocation11 + $0x84] ss:$16 sps:$4 sm:$0xff]   ;;  %v2586_v32 = vld [vmem:[#allocation11 + $0x80] ss:$16 sps:$4 sm:$0xff]   ;;  %v2573_v60 = vld [vmem:[#allocation11 + $0x2c] ss:$16 sps:$4 sm:$0xff]  }
  0xd2   :  { %349 = vmatprep.subr.bf16.mxu1 %v2547_v11  ;;  %v2594_v33 = vld [vmem:[#allocation11 + $0xa4] ss:$16 sps:$4 sm:$0xff]   ;;  %v2592_v34 = vld [vmem:[#allocation11 + $0xa0] ss:$16 sps:$4 sm:$0xff]   ;;  %v2571_v61 = vld [vmem:[#allocation11 + $0x28] ss:$16 sps:$4 sm:$0xff]  }
  0xd3   :  { %v2600_v35 = vld [vmem:[#allocation11 + $0xc4] ss:$16 sps:$4 sm:$0xff]   ;;  %v2598_v36 = vld [vmem:[#allocation11 + $0xc0] ss:$16 sps:$4 sm:$0xff]   ;;  %v2579_v62 = vld [vmem:[#allocation11 + $0x4c] ss:$16 sps:$4 sm:$0xff]  }
  0xd4   :  { %797 = vmatpush1.bf16.msra.mxu0 %v2568_v26  ;;  %v2606_v37 = vld [vmem:[#allocation11 + $0xe4] ss:$16 sps:$4 sm:$0xff]   ;;  %v2604_v38 = vld [vmem:[#allocation11 + $0xe0] ss:$16 sps:$4 sm:$0xff]   ;;  %v2577_v63 = vld [vmem:[#allocation11 + $0x48] ss:$16 sps:$4 sm:$0xff]  }
  0xd5   :  { %350 = vmatpush1.bf16.msra.mxu1 %v2549_v12  ;;  %798 = vmatprep.subr.bf16.mxu0 %v2576_v27  ;;  %v2612_v39 = vld [vmem:[#allocation11 + $0x104] ss:$16 sps:$4 sm:$0xff]   ;;  %v2610_v40 = vld [vmem:[#allocation11 + $0x100] ss:$16 sps:$4 sm:$0xff]   ;;  %v2585_v0 = vld [vmem:[#allocation11 + $0x6c] ss:$16 sps:$4 sm:$0xff]  }
  0xd6   :  { %351 = vmatprep.subr.bf16.mxu1 %v2550_v13  ;;  %v2618_v41 = vld [vmem:[#allocation11 + $0x124] ss:$16 sps:$4 sm:$0xff]   ;;  %v2616_v42 = vld [vmem:[#allocation11 + $0x120] ss:$16 sps:$4 sm:$0xff]   ;;  %v2583_v1 = vld [vmem:[#allocation11 + $0x68] ss:$16 sps:$4 sm:$0xff]  }
  0xd7   :  { %v2624_v43 = vld [vmem:[#allocation11 + $0x144] ss:$16 sps:$4 sm:$0xff]   ;;  %v2622_v44 = vld [vmem:[#allocation11 + $0x140] ss:$16 sps:$4 sm:$0xff]   ;;  %v2591_v2 = vld [vmem:[#allocation11 + $0x8c] ss:$16 sps:$4 sm:$0xff]  }
  0xd8   :  { %799 = vmatpush1.bf16.msra.mxu0 %v2574_v28  ;;  %v2630_v45 = vld [vmem:[#allocation11 + $0x164] ss:$16 sps:$4 sm:$0xff]   ;;  %v2628_v46 = vld [vmem:[#allocation11 + $0x160] ss:$16 sps:$4 sm:$0xff]   ;;  %v2589_v3 = vld [vmem:[#allocation11 + $0x88] ss:$16 sps:$4 sm:$0xff]  }
  0xd9   :  { %352 = vmatpush1.bf16.msra.mxu1 %v2552_v14  ;;  %800 = vmatprep.subr.bf16.mxu0 %v2582_v29  ;;  %v2636_v47 = vld [vmem:[#allocation11 + $0x184] ss:$16 sps:$4 sm:$0xff]   ;;  %v2634_v48 = vld [vmem:[#allocation11 + $0x180] ss:$16 sps:$4 sm:$0xff]   ;;  %v2597_v4 = vld [vmem:[#allocation11 + $0xac] ss:$16 sps:$4 sm:$0xff]  }
  0xda   :  { %353 = vmatprep.subr.bf16.mxu1 %v2553_v15  ;;  %v2642_v49 = vld [vmem:[#allocation11 + $0x1a4] ss:$16 sps:$4 sm:$0xff]   ;;  %v2640_v50 = vld [vmem:[#allocation11 + $0x1a0] ss:$16 sps:$4 sm:$0xff]   ;;  %v2595_v5 = vld [vmem:[#allocation11 + $0xa8] ss:$16 sps:$4 sm:$0xff]  }
  0xdb   :  { %v2603_v6 = vld [vmem:[#allocation11 + $0xcc] ss:$16 sps:$4 sm:$0xff]   ;;  %v2601_v7 = vld [vmem:[#allocation11 + $0xc8] ss:$16 sps:$4 sm:$0xff]   ;;  %v2648_v22 = vld [vmem:[#allocation11 + $0x1c4] ss:$16 sps:$4 sm:$0xff]  }
  0xdc   :  { %801 = vmatpush1.bf16.msra.mxu0 %v2580_v30  ;;  %v2609_v8 = vld [vmem:[#allocation11 + $0xec] ss:$16 sps:$4 sm:$0xff]   ;;  %v2607_v9 = vld [vmem:[#allocation11 + $0xe8] ss:$16 sps:$4 sm:$0xff]   ;;  %v2654_v26 = vld [vmem:[#allocation11 + $0x1e4] ss:$16 sps:$4 sm:$0xff]  }
  0xdd   :  { %354 = vmatpush1.bf16.msra.mxu1 %v2555_v16  ;;  %802 = vmatprep.subr.bf16.mxu0 %v2588_v31  ;;  %v2615_v10 = vld [vmem:[#allocation11 + $0x10c] ss:$16 sps:$4 sm:$0xff]   ;;  %v2613_v11 = vld [vmem:[#allocation11 + $0x108] ss:$16 sps:$4 sm:$0xff]   ;;  %v2652_v28 = vld [vmem:[#allocation11 + $0x1e0] ss:$16 sps:$4 sm:$0xff]  }
  0xde   :  { %355 = vmatprep.subr.bf16.mxu1 %v2556_v17  ;;  %v2621_v12 = vld [vmem:[#allocation11 + $0x12c] ss:$16 sps:$4 sm:$0xff]   ;;  %v2619_v13 = vld [vmem:[#allocation11 + $0x128] ss:$16 sps:$4 sm:$0xff]   ;;  %v2663_v31 = vld [vmem:[#allocation14 + $0xc] ss:$16 sps:$4 sm:$0xff]  }
  0xdf   :  { %v2627_v14 = vld [vmem:[#allocation11 + $0x14c] ss:$16 sps:$4 sm:$0xff]   ;;  %v2625_v15 = vld [vmem:[#allocation11 + $0x148] ss:$16 sps:$4 sm:$0xff]   ;;  %s2196_s21 = sshll.u32 %s3180_s10, 4  ;;  %s2197_s21 = int_to_ptr.vmem [resolvable:$true] %s2196_s21 }
  0xe0   :  { %803 = vmatpush1.bf16.msra.mxu0 %v2586_v32  ;;  %v2633_v16 = vld [vmem:[#allocation11 + $0x16c] ss:$16 sps:$4 sm:$0xff]   ;;  %v2631_v17 = vld [vmem:[#allocation11 + $0x168] ss:$16 sps:$4 sm:$0xff]   ;;  %v253_v32 = vlaneseq  ;;  %s3124_s7 = scalar_lea.vmem %s2197_s21, 128  ;;  %p3129_p5 = scmp.lt.s32.totalorder %s2197_s21, %s2197_s21 }
  0xe1   :  { %356 = vmatpush1.bf16.msra.mxu1 %v2558_v18  ;;  %804 = vmatprep.subr.bf16.mxu0 %v2594_v33  ;;  %v2639_v18 = vld [vmem:[#allocation11 + $0x18c] ss:$16 sps:$4 sm:$0xff]   ;;  %v2643_v21 = vld [vmem:[#allocation11 + $0x1a8] ss:$16 sps:$4 sm:$0xff]   ;;  %p3125_p4 = scmp.ne.s32.totalorder %s2197_s21, %s3124_s7  ;;  %p3130_p6 = scmp.lt.s32.totalorder %s3124_s7, %s3124_s7 }
  0xe2   :  { %357 = vmatprep.subr.bf16.mxu1 %v2559_v19  ;;  %v2637_v19 = vld [vmem:[#allocation11 + $0x188] ss:$16 sps:$4 sm:$0xff]   ;;  %v2651_v23 = vld [vmem:[#allocation11 + $0x1cc] ss:$16 sps:$4 sm:$0xff]   ;;  %v3380_v33 = vshrl.u32 %v253_v32, 7 }
  0xe3   :  { %v2649_v25 = vld [vmem:[#allocation11 + $0x1c8] ss:$16 sps:$4 sm:$0xff]   ;;  %v2657_v27 = vld [vmem:[#allocation11 + $0x1ec] ss:$16 sps:$4 sm:$0xff]   ;;  %v2735_v32 = vld [vmem:[#allocation14 + $0x18c] ss:$16 sps:$4 sm:$0xff]   ;;  %p3131_p7 = por %p3130_p6, %p3129_p5 }
  0xe4   :  { %805 = vmatpush1.bf16.msra.mxu0 %v2592_v34  ;;  %v2655_v29 = vld [vmem:[#allocation11 + $0x1e8] ss:$16 sps:$4 sm:$0xff]   ;;  %v3383_v34 = vsub.s32 0, %v3380_v33 }
  0xe5   :  { %358 = vmatpush1.bf16.msra.mxu1 %v2561_v20  ;;  %806 = vmatprep.subr.bf16.mxu0 %v2600_v35  ;;  %v2645_v20 = vld [vmem:[#allocation11 + $0x1ac] ss:$16 sps:$4 sm:$0xff]   ;;  %v2660_v30 = vld [vmem:[#allocation14 + $0x4] ss:$16 sps:$4 sm:$0xff]   ;;  %p3132_p8 = pnand %p3131_p7, %p3125_p4 }
  0xe6   :  { %835 = vmatprep.subr.bf16.mxu1 %v2567_v24  ;;  %v2646_v24 = vld [vmem:[#allocation11 + $0x1c0] ss:$16 sps:$4 sm:$0xff]   ;;  %v251_v35 = vld [vmem:[#allocation10] sm:$0x3] }
  0xe8   :  { %807 = vmatpush1.bf16.msra.mxu0 %v2598_v36  ;;  %v3386_v36 = vsub.s32 1, %v3380_v33 }
  0xe9   :  { %808 = vmatprep.subr.bf16.mxu0 %v2606_v37  ;;  %v256_v37 = vrot.slane %v251_v35, %v3383_v34 }
  0xec   :  { %809 = vmatpush1.bf16.msra.mxu0 %v2604_v38  ;;  %v260_v38 = vrot.slane %v251_v35, %v3386_v36  ;;  %v2730_v35 = vld [vmem:[#allocation14 + $0x180] ss:$16 sps:$4 sm:$0xff]  }
  0xed   :  { %810 = vmatprep.subr.bf16.mxu0 %v2612_v39 }
  0xf0   :  { %811 = vmatpush1.bf16.msra.mxu0 %v2610_v40 }
  0xf1   :  { %812 = vmatprep.subr.bf16.mxu0 %v2618_v41 }
  0xf4   :  { %813 = vmatpush1.bf16.msra.mxu0 %v2616_v42 }
  0xf5   :  { %814 = vmatprep.subr.bf16.mxu0 %v2624_v43 }
  0xf8   :  { %815 = vmatpush1.bf16.msra.mxu0 %v2622_v44 }
  0xf9   :  { %816 = vmatprep.subr.bf16.mxu0 %v2630_v45 }
  0xfc   :  { %817 = vmatpush1.bf16.msra.mxu0 %v2628_v46 }
  0xfd   :  { %818 = vmatprep.subr.bf16.mxu0 %v2636_v47 }
 0x100   :  { %819 = vmatpush1.bf16.msra.mxu0 %v2634_v48  ;;  %v2658_v48 = vld [vmem:[#allocation14] ss:$16 sps:$4 sm:$0xff]  }
 0x101   :  { %820 = vmatprep.subr.bf16.mxu0 %v2642_v49  ;;  %v2661_v49 = vld [vmem:[#allocation14 + $0x8] ss:$16 sps:$4 sm:$0xff]  }
 0x104   :  { %821 = vmatpush1.bf16.msra.mxu0 %v2640_v50 }
 0x105   :  { %822 = vmatprep.subr.bf16.mxu0 %v2648_v22  ;;  %v2715_v22 = vld [vmem:[#allocation14 + $0x128] ss:$16 sps:$4 sm:$0xff]  }
 0x108   :  { %823 = vmatpush1.bf16.msra.mxu0 %v2646_v24  ;;  %v2723_v24 = vld [vmem:[#allocation14 + $0x14c] ss:$16 sps:$4 sm:$0xff]  }
 0x109   :  { %824 = vmatprep.subr.bf16.mxu0 %v2654_v26  ;;  %v2721_v26 = vld [vmem:[#allocation14 + $0x148] ss:$16 sps:$4 sm:$0xff]  }
 0x10c   :  { %825 = vmatpush1.bf16.msra.mxu0 %v2652_v28  ;;  %v2729_v28 = vld [vmem:[#allocation14 + $0x16c] ss:$16 sps:$4 sm:$0xff]  }
 0x10d   :  { %1674 = vmatprep.subr.bf16.mxu0 %v2660_v30  ;;  %v2727_v30 = vld [vmem:[#allocation14 + $0x168] ss:$16 sps:$4 sm:$0xff]  }
 0x19f   :  { %v227_v52 = vpop.f32.mrb[0].mxu0 }
 0x1a0   :  { %v228_v53 = vadd.f32 %v2210_v51, %v227_v52  ;;  %v2503_v54 = vpop.f32.mrb[1].mxu0  ;;  %v2666_v51 = vld [vmem:[#allocation14 + $0x24] ss:$16 sps:$4 sm:$0xff]   ;;  %v2669_v52 = vld [vmem:[#allocation14 + $0x2c] ss:$16 sps:$4 sm:$0xff]  }
 0x1a1   :  { %v230_v55 = vpop.f32.mrb[2].mxu0  ;;  %v2667_v54 = vld [vmem:[#allocation14 + $0x28] ss:$16 sps:$4 sm:$0xff]  }
 0x1a2   :  { %v233_v56 = vmax.f32 %v228_v53, 0.0  ;;  %v2504_v57 = vpop.f32.mrb[3].mxu0  ;;  %v2664_v53 = vld [vmem:[#allocation14 + $0x20] ss:$16 sps:$4 sm:$0xff]   ;;  %v2672_v55 = vld [vmem:[#allocation14 + $0x44] ss:$16 sps:$4 sm:$0xff]  }
 0x1a3   :  { %v2670_v57 = vld [vmem:[#allocation14 + $0x40] ss:$16 sps:$4 sm:$0xff]  }
 0x1a4   :  { %v234_v59 = vpack.c.bf16 %v233_v56, %v233_v56  ;;  %v2675_v56 = vld [vmem:[#allocation14 + $0x4c] ss:$16 sps:$4 sm:$0xff]  }
 0x1a6   :  { %376 = vmatmul.mubr.bf16.vlgmr.msra.gmra.mrb[0].mxu1 %v234_v59  ;;  %v2678_v59 = vld [vmem:[#allocation14 + $0x64] ss:$16 sps:$4 sm:$0xff]  }
 0x1a7   :  { %836 = vmatpush1.bf16.msra.mxu1 %v2565_v58  ;;  %v2673_v58 = vld [vmem:[#allocation14 + $0x48] ss:$16 sps:$4 sm:$0xff]  }
 0x1a8   :  { %837 = vmatprep.subr.bf16.mxu1 %v2573_v60  ;;  %v2681_v60 = vld [vmem:[#allocation14 + $0x6c] ss:$16 sps:$4 sm:$0xff]  }
 0x1ab   :  { %838 = vmatpush1.bf16.msra.mxu1 %v2571_v61  ;;  %v2676_v61 = vld [vmem:[#allocation14 + $0x60] ss:$16 sps:$4 sm:$0xff]  }
 0x1ac   :  { %839 = vmatprep.subr.bf16.mxu1 %v2579_v62  ;;  %v2679_v62 = vld [vmem:[#allocation14 + $0x68] ss:$16 sps:$4 sm:$0xff]  }
 0x1af   :  { %840 = vmatpush1.bf16.msra.mxu1 %v2577_v63  ;;  %v2684_v63 = vld [vmem:[#allocation14 + $0x84] ss:$16 sps:$4 sm:$0xff]  }
 0x1b0   :  { %841 = vmatprep.subr.bf16.mxu1 %v2585_v0  ;;  %v2687_v0 = vld [vmem:[#allocation14 + $0x8c] ss:$16 sps:$4 sm:$0xff]  }
 0x1b3   :  { %842 = vmatpush1.bf16.msra.mxu1 %v2583_v1  ;;  %v2682_v1 = vld [vmem:[#allocation14 + $0x80] ss:$16 sps:$4 sm:$0xff]  }
 0x1b4   :  { %843 = vmatprep.subr.bf16.mxu1 %v2591_v2  ;;  %v2685_v2 = vld [vmem:[#allocation14 + $0x88] ss:$16 sps:$4 sm:$0xff]  }
 0x1b7   :  { %844 = vmatpush1.bf16.msra.mxu1 %v2589_v3  ;;  %v2690_v3 = vld [vmem:[#allocation14 + $0xa4] ss:$16 sps:$4 sm:$0xff]  }
 0x1b8   :  { %845 = vmatprep.subr.bf16.mxu1 %v2597_v4  ;;  %v2693_v4 = vld [vmem:[#allocation14 + $0xac] ss:$16 sps:$4 sm:$0xff]  }
 0x1bb   :  { %846 = vmatpush1.bf16.msra.mxu1 %v2595_v5  ;;  %v2688_v5 = vld [vmem:[#allocation14 + $0xa0] ss:$16 sps:$4 sm:$0xff]  }
 0x1bc   :  { %847 = vmatprep.subr.bf16.mxu1 %v2603_v6  ;;  %v2691_v6 = vld [vmem:[#allocation14 + $0xa8] ss:$16 sps:$4 sm:$0xff]  }
 0x1bf   :  { %848 = vmatpush1.bf16.msra.mxu1 %v2601_v7  ;;  %v2696_v7 = vld [vmem:[#allocation14 + $0xc4] ss:$16 sps:$4 sm:$0xff]  }
 0x1c0   :  { %849 = vmatprep.subr.bf16.mxu1 %v2609_v8  ;;  %v2699_v8 = vld [vmem:[#allocation14 + $0xcc] ss:$16 sps:$4 sm:$0xff]  }
 0x1c3   :  { %850 = vmatpush1.bf16.msra.mxu1 %v2607_v9  ;;  %v2694_v9 = vld [vmem:[#allocation14 + $0xc0] ss:$16 sps:$4 sm:$0xff]  }
 0x1c4   :  { %851 = vmatprep.subr.bf16.mxu1 %v2615_v10  ;;  %v2697_v10 = vld [vmem:[#allocation14 + $0xc8] ss:$16 sps:$4 sm:$0xff]  }
 0x1c7   :  { %852 = vmatpush1.bf16.msra.mxu1 %v2613_v11  ;;  %v2702_v11 = vld [vmem:[#allocation14 + $0xe4] ss:$16 sps:$4 sm:$0xff]  }
 0x1c8   :  { %853 = vmatprep.subr.bf16.mxu1 %v2621_v12  ;;  %v2705_v12 = vld [vmem:[#allocation14 + $0xec] ss:$16 sps:$4 sm:$0xff]  }
 0x1cb   :  { %854 = vmatpush1.bf16.msra.mxu1 %v2619_v13  ;;  %v2700_v13 = vld [vmem:[#allocation14 + $0xe0] ss:$16 sps:$4 sm:$0xff]  }
 0x1cc   :  { %855 = vmatprep.subr.bf16.mxu1 %v2627_v14  ;;  %v2703_v14 = vld [vmem:[#allocation14 + $0xe8] ss:$16 sps:$4 sm:$0xff]  }
 0x1cf   :  { %856 = vmatpush1.bf16.msra.mxu1 %v2625_v15  ;;  %v2708_v15 = vld [vmem:[#allocation14 + $0x104] ss:$16 sps:$4 sm:$0xff]  }
 0x1d0   :  { %857 = vmatprep.subr.bf16.mxu1 %v2633_v16  ;;  %v2711_v16 = vld [vmem:[#allocation14 + $0x10c] ss:$16 sps:$4 sm:$0xff]  }
 0x1d3   :  { %858 = vmatpush1.bf16.msra.mxu1 %v2631_v17  ;;  %v2706_v17 = vld [vmem:[#allocation14 + $0x100] ss:$16 sps:$4 sm:$0xff]  }
 0x1d4   :  { %859 = vmatprep.subr.bf16.mxu1 %v2639_v18  ;;  %v2709_v18 = vld [vmem:[#allocation14 + $0x108] ss:$16 sps:$4 sm:$0xff]  }
 0x1d7   :  { %860 = vmatpush1.bf16.msra.mxu1 %v2637_v19  ;;  %v2714_v19 = vld [vmem:[#allocation14 + $0x124] ss:$16 sps:$4 sm:$0xff]  }
 0x1d8   :  { %861 = vmatprep.subr.bf16.mxu1 %v2645_v20  ;;  %v2717_v20 = vld [vmem:[#allocation14 + $0x12c] ss:$16 sps:$4 sm:$0xff]  }
 0x1db   :  { %862 = vmatpush1.bf16.msra.mxu1 %v2643_v21  ;;  %v2712_v21 = vld [vmem:[#allocation14 + $0x120] ss:$16 sps:$4 sm:$0xff]  }
 0x1dc   :  { %863 = vmatprep.subr.bf16.mxu1 %v2651_v23  ;;  %v2720_v23 = vld [vmem:[#allocation14 + $0x144] ss:$16 sps:$4 sm:$0xff]  }
 0x1df   :  { %864 = vmatpush1.bf16.msra.mxu1 %v2649_v25  ;;  %v2718_v25 = vld [vmem:[#allocation14 + $0x140] ss:$16 sps:$4 sm:$0xff]  }
 0x1e0   :  { %865 = vmatprep.subr.bf16.mxu1 %v2657_v27  ;;  %v2726_v27 = vld [vmem:[#allocation14 + $0x164] ss:$16 sps:$4 sm:$0xff]  }
 0x1e3   :  { %866 = vmatpush1.bf16.msra.mxu1 %v2655_v29  ;;  %v2724_v29 = vld [vmem:[#allocation14 + $0x160] ss:$16 sps:$4 sm:$0xff]  }
 0x1e4   :  { %1756 = vmatprep.subr.bf16.mxu1 %v2663_v31  ;;  %v2732_v31 = vld [vmem:[#allocation14 + $0x184] ss:$16 sps:$4 sm:$0xff]  }
 0x279   :  { %v377_v39 = vpop.f32.mrb[0].mxu1 }
 0x27a   :  { %v378_v40 = vadd.f32 %v377_v39, %v256_v37  ;;  %v379_v41 = vpop.f32.mrb[1].mxu1  ;;  %v2733_v37 = vld [vmem:[#allocation14 + $0x188] ss:$16 sps:$4 sm:$0xff]   ;;  %v2741_v39 = vld [vmem:[#allocation14 + $0x1ac] ss:$16 sps:$4 sm:$0xff]  }
 0x27b   :  { %v380_v42 = vadd.f32 %v379_v41, %v260_v38  ;;  %v381_v43 = vpop.f32.mrb[2].mxu1  ;;  %v2738_v38 = vld [vmem:[#allocation14 + $0x1a4] ss:$16 sps:$4 sm:$0xff]   ;;  %v2739_v41 = vld [vmem:[#allocation14 + $0x1a8] ss:$16 sps:$4 sm:$0xff]  }
 0x27c   :  { %v384_v44 = vmax.f32 %v378_v40, 0.0  ;;  %v382_v45 = vpop.f32.mrb[3].mxu1  ;;  %v2736_v40 = vld [vmem:[#allocation14 + $0x1a0] ss:$16 sps:$4 sm:$0xff]   ;;  %v2747_v43 = vld [vmem:[#allocation14 + $0x1cc] ss:$16 sps:$4 sm:$0xff]  }
 0x27d   :  { %v385_v46 = vmax.f32 %v380_v42, 0.0  ;;  %v2744_v42 = vld [vmem:[#allocation14 + $0x1c4] ss:$16 sps:$4 sm:$0xff]   ;;  %v2745_v45 = vld [vmem:[#allocation14 + $0x1c8] ss:$16 sps:$4 sm:$0xff]  }
 0x27e   :  { %v386_v50 = vpack.c.bf16 %v384_v44, %v384_v44  ;;  %v2742_v44 = vld [vmem:[#allocation14 + $0x1c0] ss:$16 sps:$4 sm:$0xff]  }
 0x27f   :  { %v387_v47 = vpack.c.bf16 %v385_v46, %v385_v46  ;;  %v2750_v46 = vld [vmem:[#allocation14 + $0x1e4] ss:$16 sps:$4 sm:$0xff]  }
 0x281   :  { %826 = vmatprep.mubr.bf16.mxu0 %v387_v47  ;;  %867 = vmatprep.mubr.bf16.mxu1 %v387_v47  ;;  %v2753_v47 = vld [vmem:[#allocation14 + $0x1ec] ss:$16 sps:$4 sm:$0xff]  }
 0x282   :  { %827 = vmatmul.mubr.bf16.vlgmr.msra.gmra.mrb[4].mxu0 %v386_v50  ;;  %868 = vmatmul.mubr.bf16.vlgmr.msra.gmra.mrb[4].mxu1 %v386_v50  ;;  %v2756_v50 = vld [vmem:[#allocation14 + $0x204] ss:$16 sps:$4 sm:$0xff]  }
 0x283   :  { %1675 = vmatpush1.bf16.msra.mxu0 %v2658_v48  ;;  %1757 = vmatpush1.bf16.msra.mxu1 %v2661_v49  ;;  %v2748_v48 = vld [vmem:[#allocation14 + $0x1e0] ss:$16 sps:$4 sm:$0xff]   ;;  %v2751_v49 = vld [vmem:[#allocation14 + $0x1e8] ss:$16 sps:$4 sm:$0xff]  }
 0x284   :  { %1676 = vmatprep.subr.bf16.mxu0 %v2666_v51  ;;  %1758 = vmatprep.subr.bf16.mxu1 %v2669_v52  ;;  %v2759_v51 = vld [vmem:[#allocation14 + $0x20c] ss:$16 sps:$4 sm:$0xff]  }
 0x285   :  { %v3390_v52 = vld [vmem:[#allocation13] sm:$0xf] }
 0x287   :  { %1677 = vmatpush1.bf16.msra.mxu0 %v2664_v53  ;;  %1759 = vmatpush1.bf16.msra.mxu1 %v2667_v54  ;;  %v468_v53 = vsub.s32 3, %v3380_v33  ;;  %v457_v54 = vrot.slane %v3390_v52, %v3383_v34 }
 0x288   :  { %1678 = vmatprep.subr.bf16.mxu0 %v2672_v55  ;;  %1760 = vmatprep.subr.bf16.mxu1 %v2675_v56  ;;  %v461_v55 = vrot.slane %v3390_v52, %v3386_v36 }
 0x289   :  { %v469_v56 = vrot.slane %v3390_v52, %v468_v53 }
 0x28b   :  { %1679 = vmatpush1.bf16.msra.mxu0 %v2670_v57  ;;  %1761 = vmatpush1.bf16.msra.mxu1 %v2673_v58 }
 0x28c   :  { %1680 = vmatprep.subr.bf16.mxu0 %v2678_v59  ;;  %1762 = vmatprep.subr.bf16.mxu1 %v2681_v60 }
 0x28f   :  { %1681 = vmatpush1.bf16.msra.mxu0 %v2676_v61  ;;  %1763 = vmatpush1.bf16.msra.mxu1 %v2679_v62 }
 0x290   :  { %1682 = vmatprep.subr.bf16.mxu0 %v2684_v63  ;;  %1764 = vmatprep.subr.bf16.mxu1 %v2687_v0 }
 0x293   :  { %1683 = vmatpush1.bf16.msra.mxu0 %v2682_v1  ;;  %1765 = vmatpush1.bf16.msra.mxu1 %v2685_v2 }
 0x294   :  { %1684 = vmatprep.subr.bf16.mxu0 %v2690_v3  ;;  %1766 = vmatprep.subr.bf16.mxu1 %v2693_v4 }
 0x297   :  { %1685 = vmatpush1.bf16.msra.mxu0 %v2688_v5  ;;  %1767 = vmatpush1.bf16.msra.mxu1 %v2691_v6 }
 0x298   :  { %1686 = vmatprep.subr.bf16.mxu0 %v2696_v7  ;;  %1768 = vmatprep.subr.bf16.mxu1 %v2699_v8  ;;  %v2754_v8 = vld [vmem:[#allocation14 + $0x200] ss:$16 sps:$4 sm:$0xff]  }
 0x29b   :  { %1687 = vmatpush1.bf16.msra.mxu0 %v2694_v9  ;;  %1769 = vmatpush1.bf16.msra.mxu1 %v2697_v10  ;;  %v2757_v9 = vld [vmem:[#allocation14 + $0x208] ss:$16 sps:$4 sm:$0xff]  }
 0x29c   :  { %1688 = vmatprep.subr.bf16.mxu0 %v2702_v11  ;;  %1770 = vmatprep.subr.bf16.mxu1 %v2705_v12  ;;  %v2762_v11 = vld [vmem:[#allocation14 + $0x224] ss:$16 sps:$4 sm:$0xff]   ;;  %v2765_v12 = vld [vmem:[#allocation14 + $0x22c] ss:$16 sps:$4 sm:$0xff]  }
 0x29f   :  { %1689 = vmatpush1.bf16.msra.mxu0 %v2700_v13  ;;  %1771 = vmatpush1.bf16.msra.mxu1 %v2703_v14  ;;  %v2760_v14 = vld [vmem:[#allocation14 + $0x220] ss:$16 sps:$4 sm:$0xff]  }
 0x2a0   :  { %1690 = vmatprep.subr.bf16.mxu0 %v2708_v15  ;;  %1772 = vmatprep.subr.bf16.mxu1 %v2711_v16  ;;  %v2763_v15 = vld [vmem:[#allocation14 + $0x228] ss:$16 sps:$4 sm:$0xff]   ;;  %v2768_v16 = vld [vmem:[#allocation14 + $0x244] ss:$16 sps:$4 sm:$0xff]  }
 0x2a3   :  { %1691 = vmatpush1.bf16.msra.mxu0 %v2706_v17  ;;  %1773 = vmatpush1.bf16.msra.mxu1 %v2709_v18  ;;  %v2771_v17 = vld [vmem:[#allocation14 + $0x24c] ss:$16 sps:$4 sm:$0xff]   ;;  %v2766_v18 = vld [vmem:[#allocation14 + $0x240] ss:$16 sps:$4 sm:$0xff]  }
 0x2a4   :  { %1692 = vmatprep.subr.bf16.mxu0 %v2714_v19  ;;  %1774 = vmatprep.subr.bf16.mxu1 %v2717_v20  ;;  %v2769_v19 = vld [vmem:[#allocation14 + $0x248] ss:$16 sps:$4 sm:$0xff]   ;;  %v2774_v20 = vld [vmem:[#allocation14 + $0x264] ss:$16 sps:$4 sm:$0xff]  }
 0x2a7   :  { %1693 = vmatpush1.bf16.msra.mxu0 %v2712_v21  ;;  %1775 = vmatpush1.bf16.msra.mxu1 %v2715_v22  ;;  %v2777_v21 = vld [vmem:[#allocation14 + $0x26c] ss:$16 sps:$4 sm:$0xff]   ;;  %v2772_v22 = vld [vmem:[#allocation14 + $0x260] ss:$16 sps:$4 sm:$0xff]  }
 0x2a8   :  { %1694 = vmatprep.subr.bf16.mxu0 %v2720_v23  ;;  %1776 = vmatprep.subr.bf16.mxu1 %v2723_v24  ;;  %v2775_v23 = vld [vmem:[#allocation14 + $0x268] ss:$16 sps:$4 sm:$0xff]   ;;  %v2780_v24 = vld [vmem:[#allocation14 + $0x284] ss:$16 sps:$4 sm:$0xff]  }
 0x2ab   :  { %1695 = vmatpush1.bf16.msra.mxu0 %v2718_v25  ;;  %1777 = vmatpush1.bf16.msra.mxu1 %v2721_v26  ;;  %v2783_v25 = vld [vmem:[#allocation14 + $0x28c] ss:$16 sps:$4 sm:$0xff]   ;;  %v2778_v26 = vld [vmem:[#allocation14 + $0x280] ss:$16 sps:$4 sm:$0xff]  }
 0x2ac   :  { %1696 = vmatprep.subr.bf16.mxu0 %v2726_v27  ;;  %1778 = vmatprep.subr.bf16.mxu1 %v2729_v28  ;;  %v2781_v27 = vld [vmem:[#allocation14 + $0x288] ss:$16 sps:$4 sm:$0xff]   ;;  %v2786_v28 = vld [vmem:[#allocation14 + $0x2a4] ss:$16 sps:$4 sm:$0xff]  }
 0x2af   :  { %1697 = vmatpush1.bf16.msra.mxu0 %v2724_v29  ;;  %1779 = vmatpush1.bf16.msra.mxu1 %v2727_v30  ;;  %v2789_v29 = vld [vmem:[#allocation14 + $0x2ac] ss:$16 sps:$4 sm:$0xff]   ;;  %v2784_v30 = vld [vmem:[#allocation14 + $0x2a0] ss:$16 sps:$4 sm:$0xff]  }
 0x2b0   :  { %1698 = vmatprep.subr.bf16.mxu0 %v2732_v31  ;;  %1780 = vmatprep.subr.bf16.mxu1 %v2735_v32  ;;  %v2787_v31 = vld [vmem:[#allocation14 + $0x2a8] ss:$16 sps:$4 sm:$0xff]   ;;  %v2792_v32 = vld [vmem:[#allocation14 + $0x2c4] ss:$16 sps:$4 sm:$0xff]  }
 0x2b3   :  { %1699 = vmatpush1.bf16.msra.mxu0 %v2730_v35  ;;  %1781 = vmatpush1.bf16.msra.mxu1 %v2733_v37  ;;  %v2795_v35 = vld [vmem:[#allocation14 + $0x2cc] ss:$16 sps:$4 sm:$0xff]   ;;  %v2790_v37 = vld [vmem:[#allocation14 + $0x2c0] ss:$16 sps:$4 sm:$0xff]  }
 0x2b4   :  { %1700 = vmatprep.subr.bf16.mxu0 %v2738_v38  ;;  %1782 = vmatprep.subr.bf16.mxu1 %v2741_v39  ;;  %v2793_v38 = vld [vmem:[#allocation14 + $0x2c8] ss:$16 sps:$4 sm:$0xff]   ;;  %v2798_v39 = vld [vmem:[#allocation14 + $0x2e4] ss:$16 sps:$4 sm:$0xff]  }
 0x2b7   :  { %1701 = vmatpush1.bf16.msra.mxu0 %v2736_v40  ;;  %1783 = vmatpush1.bf16.msra.mxu1 %v2739_v41  ;;  %v2801_v40 = vld [vmem:[#allocation14 + $0x2ec] ss:$16 sps:$4 sm:$0xff]   ;;  %v2796_v41 = vld [vmem:[#allocation14 + $0x2e0] ss:$16 sps:$4 sm:$0xff]  }
 0x2b8   :  { %1702 = vmatprep.subr.bf16.mxu0 %v2744_v42  ;;  %1784 = vmatprep.subr.bf16.mxu1 %v2747_v43  ;;  %v2799_v42 = vld [vmem:[#allocation14 + $0x2e8] ss:$16 sps:$4 sm:$0xff]   ;;  %v2804_v43 = vld [vmem:[#allocation14 + $0x304] ss:$16 sps:$4 sm:$0xff]  }
 0x2bb   :  { %1703 = vmatpush1.bf16.msra.mxu0 %v2742_v44  ;;  %1785 = vmatpush1.bf16.msra.mxu1 %v2745_v45  ;;  %v2807_v44 = vld [vmem:[#allocation14 + $0x30c] ss:$16 sps:$4 sm:$0xff]   ;;  %v2802_v45 = vld [vmem:[#allocation14 + $0x300] ss:$16 sps:$4 sm:$0xff]  }
 0x2bc   :  { %1704 = vmatprep.subr.bf16.mxu0 %v2750_v46  ;;  %1786 = vmatprep.subr.bf16.mxu1 %v2753_v47  ;;  %v2805_v46 = vld [vmem:[#allocation14 + $0x308] ss:$16 sps:$4 sm:$0xff]   ;;  %v2810_v47 = vld [vmem:[#allocation14 + $0x324] ss:$16 sps:$4 sm:$0xff]  }
 0x2bf   :  { %1705 = vmatpush1.bf16.msra.mxu0 %v2748_v48  ;;  %1787 = vmatpush1.bf16.msra.mxu1 %v2751_v49  ;;  %v2813_v48 = vld [vmem:[#allocation14 + $0x32c] ss:$16 sps:$4 sm:$0xff]   ;;  %v2808_v49 = vld [vmem:[#allocation14 + $0x320] ss:$16 sps:$4 sm:$0xff]  }
 0x2c0   :  { %1715 = vmatprep.subr.bf16.mxu0 %v2756_v50  ;;  %1797 = vmatprep.subr.bf16.mxu1 %v2759_v51  ;;  %v2811_v50 = vld [vmem:[#allocation14 + $0x328] ss:$16 sps:$4 sm:$0xff]   ;;  %v2816_v51 = vld [vmem:[#allocation14 + $0x344] ss:$16 sps:$4 sm:$0xff]  }
 0x355   :  { %v828_v57 = vpop.f32.mrb[4].mxu0  ;;  %v3400_v58 = vpop.f32.mrb[4].mxu1 }
 0x356   :  { %v829_v59 = vadd.f32 %v828_v57, %v457_v54  ;;  %v830_v60 = vpop.f32.mrb[5].mxu0  ;;  %v871_v61 = vpop.f32.mrb[5].mxu1  ;;  %v2819_v54 = vld [vmem:[#allocation14 + $0x34c] ss:$16 sps:$4 sm:$0xff]   ;;  %v2822_v57 = vld [vmem:[#allocation14 + $0x364] ss:$16 sps:$4 sm:$0xff]  }
 0x357   :  { %v831_v62 = vadd.f32 %v830_v60, %v461_v55  ;;  %v872_v63 = vadd.f32 %v871_v61, %v469_v56  ;;  %v832_v0 = vpop.f32.mrb[6].mxu0  ;;  %v873_v1 = vpop.f32.mrb[6].mxu1  ;;  %v2814_v55 = vld [vmem:[#allocation14 + $0x340] ss:$16 sps:$4 sm:$0xff]   ;;  %v2817_v56 = vld [vmem:[#allocation14 + $0x348] ss:$16 sps:$4 sm:$0xff]  }
 0x358   :  { %v876_v2 = vmax.f32 %v829_v59, 0.0  ;;  %v833_v3 = vpop.f32.mrb[7].mxu0  ;;  %v874_v4 = vpop.f32.mrb[7].mxu1  ;;  %v2825_v59 = vld [vmem:[#allocation14 + $0x36c] ss:$16 sps:$4 sm:$0xff]  }
 0x359   :  { %v877_v5 = vmax.f32 %v831_v62, 0.0  ;;  %v879_v6 = vmax.f32 %v872_v63, 0.0  ;;  %v2820_v60 = vld [vmem:[#allocation14 + $0x360] ss:$16 sps:$4 sm:$0xff]   ;;  %v2823_v61 = vld [vmem:[#allocation14 + $0x368] ss:$16 sps:$4 sm:$0xff]  }
 0x35a   :  { %v880_v10 = vpack.c.bf16 %v876_v2, %v876_v2  ;;  %v2828_v62 = vld [vmem:[#allocation14 + $0x384] ss:$16 sps:$4 sm:$0xff]   ;;  %v2831_v63 = vld [vmem:[#allocation14 + $0x38c] ss:$16 sps:$4 sm:$0xff]   ;;  %v2826_v0 = vld [vmem:[#allocation14 + $0x380] ss:$16 sps:$4 sm:$0xff]  }
 0x35b   :  { %v881_v7 = vpack.c.bf16 %v877_v5, %v877_v5  ;;  %v883_v13 = vpack.c.bf16 %v879_v6, %v879_v6  ;;  %v2829_v1 = vld [vmem:[#allocation14 + $0x388] ss:$16 sps:$4 sm:$0xff]   ;;  %v464_v2 = vsub.s32 2, %v3380_v33  ;;  %v2834_v3 = vld [vmem:[#allocation14 + $0x3a4] ss:$16 sps:$4 sm:$0xff]  }
 0x35c   :  { %v2837_v4 = vld [vmem:[#allocation14 + $0x3ac] ss:$16 sps:$4 sm:$0xff]   ;;  %v2832_v5 = vld [vmem:[#allocation14 + $0x3a0] ss:$16 sps:$4 sm:$0xff]   ;;  %v2835_v6 = vld [vmem:[#allocation14 + $0x3a8] ss:$16 sps:$4 sm:$0xff]  }
 0x35d   :  { %1706 = vmatprep.mubr.bf16.mxu0 %v881_v7  ;;  %1788 = vmatprep.mubr.bf16.mxu1 %v881_v7  ;;  %v465_v7 = vrot.slane %v3390_v52, %v464_v2  ;;  %v2850_v52 = vld [vmem:[#allocation17 + $0x40] sm:$0xff]  }
 0x35e   :  { %1707 = vmatmul.mubr.bf16.vlgmr.msra.gmra.mrb[8].mxu0 %v880_v10  ;;  %1789 = vmatmul.mubr.bf16.vlgmr.msra.gmra.mrb[8].mxu1 %v880_v10  ;;  %v2838_v10 = vld [vmem:[#allocation14 + $0x3c0] ss:$16 sps:$4 sm:$0xff]  }
 0x35f   :  { %1716 = vmatpush1.bf16.msra.mxu0 %v2754_v8  ;;  %1798 = vmatpush1.bf16.msra.mxu1 %v2757_v9  ;;  %v2840_v8 = vld [vmem:[#allocation14 + $0x3c4] ss:$16 sps:$4 sm:$0xff]   ;;  %v2843_v9 = vld [vmem:[#allocation14 + $0x3cc] ss:$16 sps:$4 sm:$0xff]  }
 0x360   :  { %1747 = vmatprep.mubr.bf16.mxu0 %v883_v13  ;;  %1829 = vmatprep.mubr.bf16.mxu1 %v883_v13  ;;  %v2846_v13 = vld [vmem:[#allocation14 + $0x3e4] ss:$16 sps:$4 sm:$0xff]  }
 0x361   :  { %1717 = vmatprep.subr.bf16.mxu0 %v2762_v11  ;;  %1799 = vmatprep.subr.bf16.mxu1 %v2765_v12  ;;  %v2841_v11 = vld [vmem:[#allocation14 + $0x3c8] ss:$16 sps:$4 sm:$0xff]   ;;  %v870_v12 = vadd.f32 %v3400_v58, %v465_v7  ;;  %v2854_v58 = vld [vmem:[#allocation17 + $0x48] sm:$0xff]  }
 0x363   :  { %1718 = vmatpush1.bf16.msra.mxu0 %v2760_v14  ;;  %1800 = vmatpush1.bf16.msra.mxu1 %v2763_v15  ;;  %v2849_v14 = vld [vmem:[#allocation14 + $0x3ec] ss:$16 sps:$4 sm:$0xff]   ;;  %v2844_v15 = vld [vmem:[#allocation14 + $0x3e0] ss:$16 sps:$4 sm:$0xff]  }
 0x364   :  { %1719 = vmatprep.subr.bf16.mxu0 %v2768_v16  ;;  %1801 = vmatprep.subr.bf16.mxu1 %v2771_v17  ;;  %v2847_v16 = vld [vmem:[#allocation14 + $0x3e8] ss:$16 sps:$4 sm:$0xff]   ;;  %v878_v17 = vmax.f32 %v870_v12, 0.0 }
 0x367   :  { %1720 = vmatpush1.bf16.msra.mxu0 %v2766_v18  ;;  %1802 = vmatpush1.bf16.msra.mxu1 %v2769_v19  ;;  %v2851_v18 = vld [vmem:[#allocation17 + $0xc0] sm:$0xff]  }
 0x368   :  { %1721 = vmatprep.subr.bf16.mxu0 %v2774_v20  ;;  %1803 = vmatprep.subr.bf16.mxu1 %v2777_v21  ;;  %v2852_v19 = vld [vmem:[#allocation17] sm:$0xff]   ;;  %v882_v21 = vpack.c.bf16 %v878_v17, %v878_v17 }
 0x369   :  { %v2853_v20 = vld [vmem:[#allocation17 + $0x80] sm:$0xff]  }
 0x36b   :  { %1722 = vmatpush1.bf16.msra.mxu0 %v2772_v22  ;;  %1804 = vmatpush1.bf16.msra.mxu1 %v2775_v23  ;;  %v2855_v22 = vld [vmem:[#allocation17 + $0xc8] sm:$0xff]  }
 0x36c   :  { %1723 = vmatprep.subr.bf16.mxu0 %v2780_v24  ;;  %1805 = vmatprep.subr.bf16.mxu1 %v2783_v25  ;;  %v2856_v23 = vld [vmem:[#allocation17 + $0x8] sm:$0xff]   ;;  %v2858_v25 = vld [vmem:[#allocation17 + $0x50] sm:$0xff]  }
 0x36d   :  { %v2857_v24 = vld [vmem:[#allocation17 + $0x88] sm:$0xff]  }
 0x36f   :  { %1724 = vmatpush1.bf16.msra.mxu0 %v2778_v26  ;;  %1806 = vmatpush1.bf16.msra.mxu1 %v2781_v27  ;;  %v2859_v26 = vld [vmem:[#allocation17 + $0xd0] sm:$0xff]  }
 0x370   :  { %1725 = vmatprep.subr.bf16.mxu0 %v2786_v28  ;;  %1807 = vmatprep.subr.bf16.mxu1 %v2789_v29  ;;  %v2860_v27 = vld [vmem:[#allocation17 + $0x10] sm:$0xff]   ;;  %v2862_v29 = vld [vmem:[#allocation17 + $0x58] sm:$0xff]  }
 0x371   :  { %v2861_v28 = vld [vmem:[#allocation17 + $0x90] sm:$0xff]  }
 0x373   :  { %1726 = vmatpush1.bf16.msra.mxu0 %v2784_v30  ;;  %1808 = vmatpush1.bf16.msra.mxu1 %v2787_v31  ;;  %v2863_v30 = vld [vmem:[#allocation17 + $0xd8] sm:$0xff]  }
 0x374   :  { %1727 = vmatprep.subr.bf16.mxu0 %v2792_v32  ;;  %1809 = vmatprep.subr.bf16.mxu1 %v2795_v35  ;;  %v2864_v31 = vld [vmem:[#allocation17 + $0x18] sm:$0xff]   ;;  %v2866_v35 = vld [vmem:[#allocation17 + $0x60] sm:$0xff]  }
 0x375   :  { %v2865_v32 = vld [vmem:[#allocation17 + $0x98] sm:$0xff]  }
 0x377   :  { %1728 = vmatpush1.bf16.msra.mxu0 %v2790_v37  ;;  %1810 = vmatpush1.bf16.msra.mxu1 %v2793_v38  ;;  %v2867_v37 = vld [vmem:[#allocation17 + $0xe0] sm:$0xff]  }
 0x378   :  { %1729 = vmatprep.subr.bf16.mxu0 %v2798_v39  ;;  %1811 = vmatprep.subr.bf16.mxu1 %v2801_v40  ;;  %v2868_v38 = vld [vmem:[#allocation17 + $0x20] sm:$0xff]   ;;  %v2870_v40 = vld [vmem:[#allocation17 + $0x68] sm:$0xff]  }
 0x379   :  { %v2869_v39 = vld [vmem:[#allocation17 + $0xa0] sm:$0xff]  }
 0x37b   :  { %1730 = vmatpush1.bf16.msra.mxu0 %v2796_v41  ;;  %1812 = vmatpush1.bf16.msra.mxu1 %v2799_v42  ;;  %v2871_v41 = vld [vmem:[#allocation17 + $0xe8] sm:$0xff]  }
 0x37c   :  { %1731 = vmatprep.subr.bf16.mxu0 %v2804_v43  ;;  %1813 = vmatprep.subr.bf16.mxu1 %v2807_v44  ;;  %v2872_v42 = vld [vmem:[#allocation17 + $0x28] sm:$0xff]   ;;  %v2874_v44 = vld [vmem:[#allocation17 + $0x70] sm:$0xff]  }
 0x37d   :  { %v2873_v43 = vld [vmem:[#allocation17 + $0xa8] sm:$0xff]  }
 0x37f   :  { %1732 = vmatpush1.bf16.msra.mxu0 %v2802_v45  ;;  %1814 = vmatpush1.bf16.msra.mxu1 %v2805_v46  ;;  %v2875_v45 = vld [vmem:[#allocation17 + $0xf0] sm:$0xff]  }
 0x380   :  { %1733 = vmatprep.subr.bf16.mxu0 %v2810_v47  ;;  %1815 = vmatprep.subr.bf16.mxu1 %v2813_v48  ;;  %v2876_v46 = vld [vmem:[#allocation17 + $0x30] sm:$0xff]   ;;  %v2878_v48 = vld [vmem:[#allocation17 + $0x78] sm:$0xff]  }
 0x381   :  { %v2877_v47 = vld [vmem:[#allocation17 + $0xb0] sm:$0xff]  }
 0x383   :  { %1734 = vmatpush1.bf16.msra.mxu0 %v2808_v49  ;;  %1816 = vmatpush1.bf16.msra.mxu1 %v2811_v50  ;;  %v2879_v49 = vld [vmem:[#allocation17 + $0xf8] sm:$0xff]  }
 0x384   :  { %1735 = vmatprep.subr.bf16.mxu0 %v2816_v51  ;;  %1817 = vmatprep.subr.bf16.mxu1 %v2819_v54  ;;  %v2880_v50 = vld [vmem:[#allocation17 + $0x38] sm:$0xff]  }
 0x385   :  { %v2881_v51 = vld [vmem:[#allocation17 + $0xb8] sm:$0xff]  }
 0x386   :  { %v1012_v54 = vld [vmem:[#allocation16] sm:$0xf] }
 0x387   :  { %1736 = vmatpush1.bf16.msra.mxu0 %v2814_v55  ;;  %1818 = vmatpush1.bf16.msra.mxu1 %v2817_v56  ;;  %v1017_v55 = vrot.slane %v1012_v54, %v3383_v34  ;;  %v1025_v56 = vrot.slane %v1012_v54, %v464_v2 }
 0x388   :  { %1737 = vmatprep.subr.bf16.mxu0 %v2822_v57  ;;  %1819 = vmatprep.subr.bf16.mxu1 %v2825_v59  ;;  %v1021_v57 = vrot.slane %v1012_v54, %v3386_v36  ;;  %v1029_v59 = vrot.slane %v1012_v54, %v468_v53 }
 0x38b   :  { %1738 = vmatpush1.bf16.msra.mxu0 %v2820_v60  ;;  %1820 = vmatpush1.bf16.msra.mxu1 %v2823_v61 }
 0x38c   :  { %1739 = vmatprep.subr.bf16.mxu0 %v2828_v62  ;;  %1821 = vmatprep.subr.bf16.mxu1 %v2831_v63 }
 0x38f   :  { %1740 = vmatpush1.bf16.msra.mxu0 %v2826_v0  ;;  %1822 = vmatpush1.bf16.msra.mxu1 %v2829_v1 }
 0x390   :  { %1741 = vmatprep.subr.bf16.mxu0 %v2834_v3  ;;  %1823 = vmatprep.subr.bf16.mxu1 %v2837_v4 }
 0x393   :  { %1742 = vmatpush1.bf16.msra.mxu0 %v2832_v5  ;;  %1824 = vmatpush1.bf16.msra.mxu1 %v2835_v6 }
 0x394   :  { %1743 = vmatprep.subr.bf16.mxu0 %v2840_v8  ;;  %1825 = vmatprep.subr.bf16.mxu1 %v2843_v9 }
 0x397   :  { %1744 = vmatpush1.bf16.msra.mxu0 %v2838_v10  ;;  %1826 = vmatpush1.bf16.msra.mxu1 %v2841_v11 }
 0x398   :  { %1745 = vmatprep.subr.bf16.mxu0 %v2846_v13  ;;  %1827 = vmatprep.subr.bf16.mxu1 %v2849_v14  ;;  %v2420_v14 = vld [vmem:[#allocation19] ss:$0 sm:$0xff] }
 0x39b   :  { %1746 = vmatpush1.bf16.msra.mxu0 %v2844_v15  ;;  %1828 = vmatpush1.bf16.msra.mxu1 %v2847_v16 }
 0x39c   :  { %2455 = vmatprep.subr.bf16.mxu0 %v2850_v52  ;;  %2477 = vmatprep.subr.bf16.mxu1 %v2851_v18 }
 0x39e   :  { %1748 = vmatmul.mubr.bf16.vlgmr.msra.gmra.mrb[8].mxu0 %v882_v21  ;;  %1830 = vmatmul.mubr.bf16.vlgmr.msra.gmra.mrb[8].mxu1 %v882_v21 }
 0x39f   :  { %2456 = vmatpush3.bf16.msra.mxu0 %v2852_v19  ;;  %2478 = vmatpush3.bf16.msra.mxu1 %v2853_v20 }
 0x3a0   :  { %2457 = vmatprep.subr.bf16.mxu0 %v2854_v58  ;;  %2479 = vmatprep.subr.bf16.mxu1 %v2855_v22 }
 0x3a3   :  { %2458 = vmatpush3.bf16.msra.mxu0 %v2856_v23  ;;  %2480 = vmatpush3.bf16.msra.mxu1 %v2857_v24 }
 0x3a4   :  { %2459 = vmatprep.subr.bf16.mxu0 %v2858_v25  ;;  %2481 = vmatprep.subr.bf16.mxu1 %v2859_v26 }
 0x3a7   :  { %2460 = vmatpush3.bf16.msra.mxu0 %v2860_v27  ;;  %2482 = vmatpush3.bf16.msra.mxu1 %v2861_v28 }
 0x3a8   :  { %2461 = vmatprep.subr.bf16.mxu0 %v2862_v29  ;;  %2483 = vmatprep.subr.bf16.mxu1 %v2863_v30 }
 0x3ab   :  { %2462 = vmatpush3.bf16.msra.mxu0 %v2864_v31  ;;  %2484 = vmatpush3.bf16.msra.mxu1 %v2865_v32 }
 0x3ac   :  { %2463 = vmatprep.subr.bf16.mxu0 %v2866_v35  ;;  %2485 = vmatprep.subr.bf16.mxu1 %v2867_v37 }
 0x3af   :  { %2464 = vmatpush3.bf16.msra.mxu0 %v2868_v38  ;;  %2486 = vmatpush3.bf16.msra.mxu1 %v2869_v39 }
 0x3b0   :  { %2465 = vmatprep.subr.bf16.mxu0 %v2870_v40  ;;  %2487 = vmatprep.subr.bf16.mxu1 %v2871_v41 }
 0x3b3   :  { %2466 = vmatpush3.bf16.msra.mxu0 %v2872_v42  ;;  %2488 = vmatpush3.bf16.msra.mxu1 %v2873_v43 }
 0x3b4   :  { %2467 = vmatprep.subr.bf16.mxu0 %v2874_v44  ;;  %2489 = vmatprep.subr.bf16.mxu1 %v2875_v45 }
 0x3b7   :  { %2468 = vmatpush3.bf16.msra.mxu0 %v2876_v46  ;;  %2490 = vmatpush3.bf16.msra.mxu1 %v2877_v47 }
 0x3b8   :  { %2469 = vmatprep.subr.bf16.mxu0 %v2878_v48  ;;  %2491 = vmatprep.subr.bf16.mxu1 %v2879_v49 }
 0x3bb   :  { %2470 = vmatpush3.bf16.msra.mxu0 %v2880_v50  ;;  %2492 = vmatpush3.bf16.msra.mxu1 %v2881_v51 }
 0x471   :  { %v1749_v60 = vpop.f32.mrb[8].mxu0  ;;  %v1831_v61 = vpop.f32.mrb[8].mxu1 }
 0x472   :  { %v2505_v62 = vadd.f32 %v1749_v60, %v1017_v55  ;;  %v2507_v63 = vadd.f32 %v1831_v61, %v1025_v56  ;;  %v1751_v0 = vpop.f32.mrb[9].mxu0  ;;  %v1833_v1 = vpop.f32.mrb[9].mxu1 }
 0x473   :  { %v2506_v3 = vadd.f32 %v1751_v0, %v1021_v57  ;;  %v2508_v4 = vadd.f32 %v1833_v1, %v1029_v59  ;;  %v1753_v5 = vpop.f32.mrb[10].mxu0  ;;  %v1835_v6 = vpop.f32.mrb[10].mxu1 }
 0x474   :  { %v1838_v7 = vmax.f32 %v2505_v62, 0.0  ;;  %v1840_v34 = vmax.f32 %v2507_v63, 0.0  ;;  %v1754_v8 = vpop.f32.mrb[11].mxu0  ;;  %v1836_v9 = vpop.f32.mrb[11].mxu1 }
 0x475   :  { %v1839_v2 = vmax.f32 %v2506_v3, 0.0  ;;  %v1841_v10 = vmax.f32 %v2508_v4, 0.0 }
 0x476   :  { %v1842_v33 = vpack.c.bf16 %v1838_v7, %v1838_v7  ;;  %v1844_v53 = vpack.c.bf16 %v1840_v34, %v1840_v34 }
 0x477   :  { %v1843_v36 = vpack.c.bf16 %v1839_v2, %v1839_v2  ;;  %v1845_v11 = vpack.c.bf16 %v1841_v10, %v1841_v10 }
 0x479   :  { %2141 = vmatprep.mubr.bf16.mxu0 %v1843_v36  ;;  %2181 = vmatprep.mubr.bf16.mxu1 %v1845_v11 }
 0x47a   :  { %2142 = vmatmul.mubr.bf16.vlgmr.msra.gmra.mrb[12].mxu0 %v1842_v33  ;;  %2182 = vmatmul.mubr.bf16.vlgmr.msra.gmra.mrb[12].mxu1 %v1844_v53 }
 0x54d   :  { %v2471_v12 = vpop.f32.mrb[12].mxu0  ;;  %v2493_v13 = vpop.f32.mrb[12].mxu1 }
 0x54e   :  { %v2472_v15 = vpop.f32.mrb[13].mxu0  ;;  %v2494_v16 = vpop.f32.mrb[13].mxu1 }
 0x54f   :  { %v2473_v17 = vadd.f32 %v2472_v15, %v2471_v12  ;;  %v2495_v52 = vadd.f32 %v2494_v16, %v2493_v13  ;;  %v2474_v18 = vpop.f32.mrb[14].mxu0  ;;  %v2496_v19 = vpop.f32.mrb[14].mxu1 }
 0x550   :  { %v2475_v20 = vpop.f32.mrb[15].mxu0  ;;  %v2497_v21 = vpop.f32.mrb[15].mxu1 }
 0x551   :  { %v2144_v58 = vadd.f32 %v2473_v17, %v2420_v14 }
 0x553   :  { %v2184_v22 = vadd.f32 %v2495_v52, %v2144_v58 }
 0x555   :  { %2189 = vst [vmem:[#allocation20] sm:$0xff] %v2184_v22 }
 0x556   :  { %3135 = shalt.err (!%p3132_p8)
}
 0x557   :  { %s3136_s20 = scalar_lea.hbm %s3436_s11, 128 }
 0x558   :  { %p3137_p9 = scmp.ne.s32.totalorder %s3436_s11, %s3136_s20  ;;  %p3140_p10 = scmp.lt.u32.totalorder %s3136_s20, %s3436_s11 }
 0x55a   :  { %p3142_p11 = pnand %p3140_p10, %p3137_p9 }
 0x55c   :  { %3145 = shalt.err (!%p3142_p11)
}
 0x55d   :  { %2199 = dma.vmem_to_hbm [thread:$0]  %s2197_s21, 128, %s3436_s11, [#allocation4]  }
 0x55e   :  { %3158 = dma.done.wait [#allocation4], 128  }
 0x55f   :  { %3159 = vsyncadd [#allocation4], 4294967168 }
 0x560   :  { %2203 = vsyncpa [#allocation3], 1 }
 0x561   :  { %2204 = vsyncpa [#allocation6], 1 }
 0x562   :  { %2205 = vsyncpa [#allocation9], 1 }
 0x563   :  { %2206 = vsyncpa [#allocation12], 1 }
 0x564   :  { %2207 = vsyncpa [#allocation15], 1 }
 0x565   :  { %2208 = vsyncpa [#allocation18], 1 }
 0x566   :  { %2209 = vsyncpa [#allocation4], 1 }

</bundles_post_ra>
